<compile_context>
chip_gen: v7x
topology: tpu7x:2x2x1
jax: 0.10.0
libtpu: 0.0.40
codegen_flags: <defaults>
</compile_context>

<pallas_src>
import jax
import jax.numpy as jnp
from jax import lax
from jax.experimental import pallas as pl
from jax.experimental.pallas import tpu as pltpu

NEG_SLOPE = 0.2  # LeakyReLU(0.2)
_TAPS = [(ky - 1, kx - 1) for ky in range(3) for kx in range(3)]  # k = ky*3 + kx


def _lrelu(x):
    return jnp.where(x >= 0, x, NEG_SLOPE * x)


def _build_xcols(x, masks9, W):
    """im2col for a 3x3 same-padded conv in (C, H*W) layout.

    x: (C, HW).  Returns (9*C, HW) with row k*C + i = channel i shifted by tap
    k and zeroed at the image border.  Shifts are static lane slices of a
    zero-extended flat row; masks9[k] zeroes every output position whose source
    pixel is outside the image (this also covers the row-wrap of the flat
    layout), so the padding values themselves never matter.
    """
    C, HW = x.shape
    zpad = jnp.zeros((C, W + 1), x.dtype)
    xbig = jnp.concatenate([zpad, x, zpad], axis=-1)          # (C, HW + 2W + 2)
    cols = []
    for k, (dy, dx) in enumerate(_TAPS):
        off = (W + 1) + dy * W + dx                           # static, in [0, 2W+2]
        cols.append(xbig[:, off:off + HW] * masks9[k:k + 1, :])
    return jnp.concatenate(cols, axis=0)                      # (9C, HW)


def _make_kernel(W):
    def kernel(masks9_ref, mask_ref, edge_ref,
               wt_mask_ref, s_mask_ref, b_mask_ref,
               wt_ef_ref, s_ef_ref, b_ef_ref,
               w_cg_ref, w_cm_ref, s_coin_ref, b_coin_ref,
               out1_ref, out2_ref, mm_ref):
        NB, C, HW = mask_ref.shape
        Cout = out2_ref.shape[1]

        masks9 = masks9_ref[...]        # (9, HW) tap validity masks
        wt_mask = wt_mask_ref[...]      # (C, 9C)
        wt_ef = wt_ef_ref[...]          # (Cout + C, 9C)  [edgeconv ; edgegradient]
        s_mask = s_mask_ref[...]        # (C, 1)
        b_mask = b_mask_ref[...]
        s_ef = s_ef_ref[...]            # (Cout + C, 1)
        b_ef = b_ef_ref[...]
        w_cg = w_cg_ref[...]            # (C, 1) coincide weights, edge_gradient half
        w_cm = w_cm_ref[...]            # (C, 1) coincide weights, mask half
        s_co = s_coin_ref[...]          # (1, 1)
        b_co = b_coin_ref[...]

        for n in range(NB):             # static unroll over samples in this block
            x = mask_ref[n]             # (C, HW)  original mask (lane-dense)
            xe = edge_ref[n]            # (C, HW)  nearest-resized edge

            # maskout = LeakyReLU(BN(Conv3x3(mask))) -- one im2col matmul.
            xcols_m = _build_xcols(x, masks9, W)                        # (9C, HW)
            maskout = _lrelu(
                jnp.dot(wt_mask, xcols_m, preferred_element_type=jnp.float32)
                * s_mask + b_mask)                                      # (C, HW)

            # Fused edge path: edgeconv and edgegradient share one matmul.
            xcols_e = _build_xcols(xe, masks9, W)                       # (9C, HW)
            ef = _lrelu(
                jnp.dot(wt_ef, xcols_e, preferred_element_type=jnp.float32)
                * s_ef + b_ef)                                          # (Cout+C, HW)
            out2 = ef[:Cout, :]                                         # (Cout, HW)
            egrad = ef[Cout:, :]                                        # (C, HW)

            # edgeout = LeakyReLU(BN(Conv1x1(cat(edge_gradient, mask)))),
            # computed as a split dot -- no activation concatenate.
            co = jnp.sum(w_cg * egrad + w_cm * x, axis=0, keepdims=True)  # (1, HW)
            edgeout = _lrelu(co * s_co + b_co)                          # (1, HW)

            mm = maskout * edgeout                                      # (C, HW)
            out1_ref[n] = (mm + x).astype(out1_ref.dtype)
            out2_ref[n] = out2.astype(out2_ref.dtype)
            mm_ref[n] = mm.astype(mm_ref.dtype)

    return kernel


def _nearest_resize_nchw(x, out_h, out_w):
    """F.interpolate(mode='nearest') semantics: src = floor(dst * in/out)."""
    _, _, h, w = x.shape
    idx_h = jnp.minimum(jnp.floor(jnp.arange(out_h) * (h / out_h)).astype(jnp.int32), h - 1)
    idx_w = jnp.minimum(jnp.floor(jnp.arange(out_w) * (w / out_w)).astype(jnp.int32), w - 1)
    return x[:, :, idx_h][:, :, :, idx_w]


def _pick_nb(n):
    """Samples per grid step: batch to amortize per-step overhead but keep
    >= 2 parallel grid steps when possible (two TensorCores per chip on v7x)."""
    if n <= 2:
        return 1
    for nb in range((n + 1) // 2, 0, -1):
        if n % nb == 0:
            return nb
    return 1


def forward_edge_attention(mask_nchw, edge_nchw, params):
    N, C, H, W = mask_nchw.shape
    assert H == W, "module resizes edge to (H, H); mask must be square"
    HW = H * W
    Cout = params["w_edge"].shape[-1]

    edge_rs = _nearest_resize_nchw(edge_nchw, H, H)

    # NCHW -> (N, C, H*W): free reshape, lane-dense last axis (no transposes).
    mask_flat = mask_nchw.reshape(N, C, HW)
    edge_flat = edge_rs.reshape(N, C, HW)

    # im2col weight: (3,3,Cin,Cout) HWIO -> (Cout, 9*Cin), tap-major/channel-minor.
    def im2col_w(w):
        cin, cout = w.shape[2], w.shape[3]
        return jnp.transpose(w.reshape(9, cin, cout), (2, 0, 1)).reshape(cout, 9 * cin)

    col = lambda v: jnp.asarray(v, jnp.float32).reshape(-1, 1)

    wt_mask = im2col_w(params["w_mask"])                                   # (C, 9C)
    wt_ef = jnp.concatenate(
        [im2col_w(params["w_edge"]), im2col_w(params["w_grad"])], axis=0)  # (Cout+C, 9C)
    s_mask, b_mask = col(params["s_mask"]), col(params["b_mask"])
    s_ef = jnp.concatenate([col(params["s_edge"]), col(params["s_grad"])], axis=0)
    b_ef = jnp.concatenate([col(params["b_edge"]), col(params["b_grad"])], axis=0)
    w_cg = params["w_coin"][:C].reshape(C, 1)   # coincide: edge_gradient half
    w_cm = params["w_coin"][C:].reshape(C, 1)   # coincide: mask half
    s_coin, b_coin = col(params["s_coin"]), col(params["b_coin"])

    # 3x3 tap validity masks over the flattened H*W spatial axis (hoisted here;
    # loaded once per grid step in VMEM).
    hh, ww = jnp.arange(H), jnp.arange(W)
    rows = []
    for dy, dx in _TAPS:
        mh = (hh + dy >= 0) & (hh + dy < H)
        mw = (ww + dx >= 0) & (ww + dx < W)
        rows.append((mh[:, None] & mw[None, :]).reshape(HW))
    masks9 = jnp.stack(rows).astype(jnp.float32)                           # (9, HW)

    NB = _pick_nb(N)
    grid = (N // NB,)

    batched = lambda c: pl.BlockSpec((NB, c, HW), lambda n: (n, 0, 0))
    whole = lambda a: pl.BlockSpec(a.shape, lambda n, _nd=a.ndim: (0,) * _nd)

    out_shapes = (
        jax.ShapeDtypeStruct((N, C, HW), jnp.float32),     # output1 (NCHW-flat)
        jax.ShapeDtypeStruct((N, Cout, HW), jnp.float32),  # output2
        jax.ShapeDtypeStruct((N, C, HW), jnp.float32),     # maskmulti
    )

    out1, out2, mm = pl.pallas_call(
        _make_kernel(W),
        out_shape=out_shapes,
        grid=grid,
        in_specs=[whole(masks9), batched(C), batched(C),
                  whole(wt_mask), whole(s_mask), whole(b_mask),
                  whole(wt_ef), whole(s_ef), whole(b_ef),
                  whole(w_cg), whole(w_cm), whole(s_coin), whole(b_coin)],
        out_specs=(batched(C), batched(Cout), batched(C)),
        compiler_params=pltpu.CompilerParams(dimension_semantics=("parallel",)),
    )(masks9, mask_flat, edge_flat,
      wt_mask, s_mask, b_mask,
      wt_ef, s_ef, b_ef,
      w_cg, w_cm, s_coin, b_coin)

    # (N, C, H*W) -> NCHW: free reshapes (same memory layout), no transposes.
    return (out1.reshape(N, C, H, W),
            out2.reshape(N, Cout, H, W),
            mm.reshape(N, C, H, W))


def init_params(key, C, Cout, eps=1e-5):
    ks = jax.random.split(key, 16)

    def conv_w(k, kh, kw, cin, cout):
        return 0.02 * jax.random.normal(k, (kh, kw, cin, cout), jnp.float32)

    def bn_fold(kg, kb, km, c):
        gamma = 1.0 + 0.02 * jax.random.normal(kg, (c,), jnp.float32)
        beta = 0.01 * jax.random.normal(kb, (c,), jnp.float32)
        mean = 0.1 * jax.random.normal(km, (c,), jnp.float32)
        var = jnp.ones((c,), jnp.float32)
        s = gamma / jnp.sqrt(var + eps)
        b = beta - mean * s
        return s, b

    s_mask, b_mask = bn_fold(ks[1], ks[2], ks[3], C)
    s_grad, b_grad = bn_fold(ks[5], ks[6], ks[7], C)
    s_coin, b_coin = bn_fold(ks[9], ks[10], ks[11], 1)
    s_edge, b_edge = bn_fold(ks[13], ks[14], ks[15], Cout)
    return dict(
        w_mask=conv_w(ks[0], 3, 3, C, C), s_mask=s_mask, b_mask=b_mask,
        w_grad=conv_w(ks[4], 3, 3, C, C), s_grad=s_grad, b_grad=b_grad,
        w_coin=0.02 * jax.random.normal(ks[8], (2 * C, 1), jnp.float32),
        s_coin=s_coin, b_coin=b_coin,
        w_edge=conv_w(ks[12], 3, 3, C, Cout), s_edge=s_edge, b_edge=b_edge,
    )


def ref_forward(mask_nchw, edge_nchw, params):
    """Pure-JAX reference (lax.conv) matching the PyTorch forward (eval-mode BN)."""
    N, C, H, W = mask_nchw.shape
    edge_rs = _nearest_resize_nchw(edge_nchw, H, H)

    def conv3(x, w_hwio):
        w = jnp.transpose(w_hwio, (3, 2, 0, 1))  # HWIO -> OIHW
        return lax.conv_general_dilated(x, w, (1, 1), ((1, 1), (1, 1)),
                                        dimension_numbers=('NCHW', 'OIHW', 'NCHW'))

    def bn_lrelu(x, s, b):
        y = x * s.reshape(1, -1, 1, 1) + b.reshape(1, -1, 1, 1)
        return jnp.where(y >= 0, y, NEG_SLOPE * y)

    maskout = bn_lrelu(conv3(mask_nchw, params['w_mask']), params['s_mask'], params['b_mask'])
    edge_grad = bn_lrelu(conv3(edge_rs, params['w_grad']), params['s_grad'], params['b_grad'])
    concat = jnp.concatenate([edge_grad, mask_nchw], axis=1)
    w1 = params['w_coin'].T.reshape(1, 2 * C, 1, 1)  # OIHW
    edgeout = lax.conv_general_dilated(concat, w1, (1, 1), ((0, 0), (0, 0)),
                                       dimension_numbers=('NCHW', 'OIHW', 'NCHW'))
    edgeout = bn_lrelu(edgeout, params['s_coin'], params['b_coin'])
    maskmulti = maskout * edgeout
    out1 = maskmulti + mask_nchw
    out2 = bn_lrelu(conv3(edge_rs, params['w_edge']), params['s_edge'], params['b_edge'])
    return out1, out2, maskmulti


if __name__ == "__main__":
    key = jax.random.PRNGKey(0)
    N, C, H, W = 2, 4, 16, 16      # mask: (N, C, H, W)
    he, we = 8, 8                  # edge: (N, C, he, we), resized to (H, H)
    Cout = 8                       # outchannels

    kmask, kedge, kparams = jax.random.split(key, 3)
    mask = jax.random.normal(kmask, (N, C, H, W), jnp.float32)
    edge = jax.random.normal(kedge, (N, C, he, we), jnp.float32)
    params = init_params(kparams, C, Cout)

    out1, out2, mm = forward_edge_attention(mask, edge, params)
    jax.block_until_ready((out1, out2, mm))

    r1, r2, rm = ref_forward(mask, edge, params)
    for got, ref, name in ((out1, r1, "output1"), (out2, r2, "output2"), (mm, rm, "maskmulti")):
        err = float(jnp.max(jnp.abs(got - ref)))
        assert err < 1e-3, f"{name} mismatch: max abs err {err}"

    print("KERNEL_OK")
</pallas_src>

<mosaic_0001>
module attributes {stable_mosaic.version = 11 : i64} {
  func.func @kernel(%arg0: i32, %arg1: memref<9x256xf32, #tpu.memory_space<vmem>>, %arg2: memref<1x4x256xf32, #tpu.memory_space<vmem>>, %arg3: memref<1x4x256xf32, #tpu.memory_space<vmem>>, %arg4: memref<4x36xf32, #tpu.memory_space<vmem>>, %arg5: memref<4x1xf32, #tpu.memory_space<vmem>>, %arg6: memref<4x1xf32, #tpu.memory_space<vmem>>, %arg7: memref<12x36xf32, #tpu.memory_space<vmem>>, %arg8: memref<12x1xf32, #tpu.memory_space<vmem>>, %arg9: memref<12x1xf32, #tpu.memory_space<vmem>>, %arg10: memref<4x1xf32, #tpu.memory_space<vmem>>, %arg11: memref<4x1xf32, #tpu.memory_space<vmem>>, %arg12: memref<1x1xf32, #tpu.memory_space<vmem>>, %arg13: memref<1x1xf32, #tpu.memory_space<vmem>>, %arg14: memref<1x4x256xf32, #tpu.memory_space<vmem>>, %arg15: memref<1x8x256xf32, #tpu.memory_space<vmem>>, %arg16: memref<1x4x256xf32, #tpu.memory_space<vmem>>) attributes {dimension_semantics = [#tpu.dimension_semantics<parallel>], iteration_bounds = array<i64: 2>, scalar_prefetch = 0 : i64, scratch_operands = 0 : i64, tpu.core_type = #tpu.core_type<tc>, window_params = [{pipeline_mode = #tpu.pipeline_mode<synchronous>, transform_indices = @transform_0, window_bounds = array<i64: 9, 256>}, {transform_indices = @transform_1, window_bounds = array<i64: 1, 4, 256>}, {transform_indices = @transform_2, window_bounds = array<i64: 1, 4, 256>}, {pipeline_mode = #tpu.pipeline_mode<synchronous>, transform_indices = @transform_3, window_bounds = array<i64: 4, 36>}, {pipeline_mode = #tpu.pipeline_mode<synchronous>, transform_indices = @transform_4, window_bounds = array<i64: 4, 1>}, {pipeline_mode = #tpu.pipeline_mode<synchronous>, transform_indices = @transform_5, window_bounds = array<i64: 4, 1>}, {pipeline_mode = #tpu.pipeline_mode<synchronous>, transform_indices = @transform_6, window_bounds = array<i64: 12, 36>}, {pipeline_mode = #tpu.pipeline_mode<synchronous>, transform_indices = @transform_7, window_bounds = array<i64: 12, 1>}, {pipeline_mode = #tpu.pipeline_mode<synchronous>, transform_indices = @transform_8, window_bounds = array<i64: 12, 1>}, {pipeline_mode = #tpu.pipeline_mode<synchronous>, transform_indices = @transform_9, window_bounds = array<i64: 4, 1>}, {pipeline_mode = #tpu.pipeline_mode<synchronous>, transform_indices = @transform_10, window_bounds = array<i64: 4, 1>}, {pipeline_mode = #tpu.pipeline_mode<synchronous>, transform_indices = @transform_11, window_bounds = array<i64: 1, 1>}, {pipeline_mode = #tpu.pipeline_mode<synchronous>, transform_indices = @transform_12, window_bounds = array<i64: 1, 1>}, {transform_indices = @transform_13, window_bounds = array<i64: 1, 4, 256>}, {transform_indices = @transform_14, window_bounds = array<i64: 1, 8, 256>}, {transform_indices = @transform_15, window_bounds = array<i64: 1, 4, 256>}]} {
    %c0 = arith.constant 0 : index
    %c0_0 = arith.constant 0 : index
    %0 = vector.load %arg1[%c0, %c0_0] : memref<9x256xf32, #tpu.memory_space<vmem>>, vector<9x256xf32>
    %c0_1 = arith.constant 0 : index
    %c0_2 = arith.constant 0 : index
    %1 = vector.load %arg4[%c0_1, %c0_2] : memref<4x36xf32, #tpu.memory_space<vmem>>, vector<4x36xf32>
    %c0_3 = arith.constant 0 : index
    %c0_4 = arith.constant 0 : index
    %2 = vector.load %arg7[%c0_3, %c0_4] : memref<12x36xf32, #tpu.memory_space<vmem>>, vector<12x36xf32>
    %c0_5 = arith.constant 0 : index
    %c0_6 = arith.constant 0 : index
    %3 = vector.load %arg5[%c0_5, %c0_6] : memref<4x1xf32, #tpu.memory_space<vmem>>, vector<4x1xf32>
    %c0_7 = arith.constant 0 : index
    %c0_8 = arith.constant 0 : index
    %4 = vector.load %arg6[%c0_7, %c0_8] : memref<4x1xf32, #tpu.memory_space<vmem>>, vector<4x1xf32>
    %c0_9 = arith.constant 0 : index
    %c0_10 = arith.constant 0 : index
    %5 = vector.load %arg8[%c0_9, %c0_10] : memref<12x1xf32, #tpu.memory_space<vmem>>, vector<12x1xf32>
    %c0_11 = arith.constant 0 : index
    %c0_12 = arith.constant 0 : index
    %6 = vector.load %arg9[%c0_11, %c0_12] : memref<12x1xf32, #tpu.memory_space<vmem>>, vector<12x1xf32>
    %c0_13 = arith.constant 0 : index
    %c0_14 = arith.constant 0 : index
    %7 = vector.load %arg10[%c0_13, %c0_14] : memref<4x1xf32, #tpu.memory_space<vmem>>, vector<4x1xf32>
    %c0_15 = arith.constant 0 : index
    %c0_16 = arith.constant 0 : index
    %8 = vector.load %arg11[%c0_15, %c0_16] : memref<4x1xf32, #tpu.memory_space<vmem>>, vector<4x1xf32>
    %c0_17 = arith.constant 0 : index
    %c0_18 = arith.constant 0 : index
    %9 = vector.load %arg12[%c0_17, %c0_18] : memref<1x1xf32, #tpu.memory_space<vmem>>, vector<1x1xf32>
    %c0_19 = arith.constant 0 : index
    %c0_20 = arith.constant 0 : index
    %10 = vector.load %arg13[%c0_19, %c0_20] : memref<1x1xf32, #tpu.memory_space<vmem>>, vector<1x1xf32>
    %c0_21 = arith.constant 0 : index
    %c0_22 = arith.constant 0 : index
    %c0_23 = arith.constant 0 : index
    %11 = vector.load %arg2[%c0_21, %c0_22, %c0_23] : memref<1x4x256xf32, #tpu.memory_space<vmem>>, vector<1x4x256xf32>
    %12 = vector.shape_cast %11 : vector<1x4x256xf32> to vector<4x256xf32>
    %c0_24 = arith.constant 0 : index
    %c0_25 = arith.constant 0 : index
    %c0_26 = arith.constant 0 : index
    %13 = vector.load %arg3[%c0_24, %c0_25, %c0_26] : memref<1x4x256xf32, #tpu.memory_space<vmem>>, vector<1x4x256xf32>
    %14 = vector.shape_cast %13 : vector<1x4x256xf32> to vector<4x256xf32>
    %cst = arith.constant 0.000000e+00 : f32
    %15 = vector.broadcast %cst : f32 to vector<4x17xf32>
    %16 = tpu.concatenate %15, %12, %15 in 1 : vector<4x17xf32>, vector<4x256xf32>, vector<4x17xf32> -> vector<4x290xf32>
    %17 = vector.extract_strided_slice %16 {offsets = [0, 0], sizes = [4, 256], strides = [1, 1]} : vector<4x290xf32> to vector<4x256xf32>
    %18 = vector.extract_strided_slice %0 {offsets = [0, 0], sizes = [1, 256], strides = [1, 1]} : vector<9x256xf32> to vector<1x256xf32>
    %19 = vector.broadcast %18 : vector<1x256xf32> to vector<4x256xf32>
    %20 = arith.mulf %17, %19 : vector<4x256xf32>
    %21 = vector.extract_strided_slice %16 {offsets = [0, 1], sizes = [4, 256], strides = [1, 1]} : vector<4x290xf32> to vector<4x256xf32>
    %22 = vector.extract_strided_slice %0 {offsets = [1, 0], sizes = [1, 256], strides = [1, 1]} : vector<9x256xf32> to vector<1x256xf32>
    %23 = vector.broadcast %22 : vector<1x256xf32> to vector<4x256xf32>
    %24 = arith.mulf %21, %23 : vector<4x256xf32>
    %25 = vector.extract_strided_slice %16 {offsets = [0, 2], sizes = [4, 256], strides = [1, 1]} : vector<4x290xf32> to vector<4x256xf32>
    %26 = vector.extract_strided_slice %0 {offsets = [2, 0], sizes = [1, 256], strides = [1, 1]} : vector<9x256xf32> to vector<1x256xf32>
    %27 = vector.broadcast %26 : vector<1x256xf32> to vector<4x256xf32>
    %28 = arith.mulf %25, %27 : vector<4x256xf32>
    %29 = vector.extract_strided_slice %16 {offsets = [0, 16], sizes = [4, 256], strides = [1, 1]} : vector<4x290xf32> to vector<4x256xf32>
    %30 = vector.extract_strided_slice %0 {offsets = [3, 0], sizes = [1, 256], strides = [1, 1]} : vector<9x256xf32> to vector<1x256xf32>
    %31 = vector.broadcast %30 : vector<1x256xf32> to vector<4x256xf32>
    %32 = arith.mulf %29, %31 : vector<4x256xf32>
    %33 = vector.extract_strided_slice %16 {offsets = [0, 17], sizes = [4, 256], strides = [1, 1]} : vector<4x290xf32> to vector<4x256xf32>
    %34 = vector.extract_strided_slice %0 {offsets = [4, 0], sizes = [1, 256], strides = [1, 1]} : vector<9x256xf32> to vector<1x256xf32>
    %35 = vector.broadcast %34 : vector<1x256xf32> to vector<4x256xf32>
    %36 = arith.mulf %33, %35 : vector<4x256xf32>
    %37 = vector.extract_strided_slice %16 {offsets = [0, 18], sizes = [4, 256], strides = [1, 1]} : vector<4x290xf32> to vector<4x256xf32>
    %38 = vector.extract_strided_slice %0 {offsets = [5, 0], sizes = [1, 256], strides = [1, 1]} : vector<9x256xf32> to vector<1x256xf32>
    %39 = vector.broadcast %38 : vector<1x256xf32> to vector<4x256xf32>
    %40 = arith.mulf %37, %39 : vector<4x256xf32>
    %41 = vector.extract_strided_slice %16 {offsets = [0, 32], sizes = [4, 256], strides = [1, 1]} : vector<4x290xf32> to vector<4x256xf32>
    %42 = vector.extract_strided_slice %0 {offsets = [6, 0], sizes = [1, 256], strides = [1, 1]} : vector<9x256xf32> to vector<1x256xf32>
    %43 = vector.broadcast %42 : vector<1x256xf32> to vector<4x256xf32>
    %44 = arith.mulf %41, %43 : vector<4x256xf32>
    %45 = vector.extract_strided_slice %16 {offsets = [0, 33], sizes = [4, 256], strides = [1, 1]} : vector<4x290xf32> to vector<4x256xf32>
    %46 = vector.extract_strided_slice %0 {offsets = [7, 0], sizes = [1, 256], strides = [1, 1]} : vector<9x256xf32> to vector<1x256xf32>
    %47 = vector.broadcast %46 : vector<1x256xf32> to vector<4x256xf32>
    %48 = arith.mulf %45, %47 : vector<4x256xf32>
    %49 = vector.extract_strided_slice %16 {offsets = [0, 34], sizes = [4, 256], strides = [1, 1]} : vector<4x290xf32> to vector<4x256xf32>
    %50 = vector.extract_strided_slice %0 {offsets = [8, 0], sizes = [1, 256], strides = [1, 1]} : vector<9x256xf32> to vector<1x256xf32>
    %51 = vector.broadcast %50 : vector<1x256xf32> to vector<4x256xf32>
    %52 = arith.mulf %49, %51 : vector<4x256xf32>
    %53 = tpu.concatenate %20, %24, %28, %32, %36, %40, %44, %48, %52 in 0 : vector<4x256xf32>, vector<4x256xf32>, vector<4x256xf32>, vector<4x256xf32>, vector<4x256xf32>, vector<4x256xf32>, vector<4x256xf32>, vector<4x256xf32>, vector<4x256xf32> -> vector<36x256xf32>
    %cst_27 = arith.constant dense<0.000000e+00> : vector<4x256xf32>
    %54 = tpu.matmul %1, %53, %cst_27 {dimension_numbers = #tpu.dot_dimension_numbers<[1], [0], [0], [1], [0, 0, 1, 1], [], []>} : vector<4x36xf32>, vector<36x256xf32>, vector<4x256xf32> -> vector<4x256xf32>
    %55 = vector.broadcast %3 : vector<4x1xf32> to vector<4x256xf32>
    %56 = arith.mulf %54, %55 : vector<4x256xf32>
    %57 = vector.broadcast %4 : vector<4x1xf32> to vector<4x256xf32>
    %58 = arith.addf %56, %57 : vector<4x256xf32>
    %cst_28 = arith.constant 0.000000e+00 : f32
    %59 = vector.broadcast %cst_28 : f32 to vector<4x256xf32>
    %60 = arith.cmpf oge, %58, %59 : vector<4x256xf32>
    %cst_29 = arith.constant 2.000000e-01 : f32
    %61 = vector.broadcast %cst_29 : f32 to vector<4x256xf32>
    %62 = arith.mulf %61, %58 : vector<4x256xf32>
    %63 = arith.select %60, %58, %62 : vector<4x256xi1>, vector<4x256xf32>
    %cst_30 = arith.constant 0.000000e+00 : f32
    %64 = vector.broadcast %cst_30 : f32 to vector<4x17xf32>
    %65 = tpu.concatenate %64, %14, %64 in 1 : vector<4x17xf32>, vector<4x256xf32>, vector<4x17xf32> -> vector<4x290xf32>
    %66 = vector.extract_strided_slice %65 {offsets = [0, 0], sizes = [4, 256], strides = [1, 1]} : vector<4x290xf32> to vector<4x256xf32>
    %67 = vector.extract_strided_slice %0 {offsets = [0, 0], sizes = [1, 256], strides = [1, 1]} : vector<9x256xf32> to vector<1x256xf32>
    %68 = vector.broadcast %67 : vector<1x256xf32> to vector<4x256xf32>
    %69 = arith.mulf %66, %68 : vector<4x256xf32>
    %70 = vector.extract_strided_slice %65 {offsets = [0, 1], sizes = [4, 256], strides = [1, 1]} : vector<4x290xf32> to vector<4x256xf32>
    %71 = vector.extract_strided_slice %0 {offsets = [1, 0], sizes = [1, 256], strides = [1, 1]} : vector<9x256xf32> to vector<1x256xf32>
    %72 = vector.broadcast %71 : vector<1x256xf32> to vector<4x256xf32>
    %73 = arith.mulf %70, %72 : vector<4x256xf32>
    %74 = vector.extract_strided_slice %65 {offsets = [0, 2], sizes = [4, 256], strides = [1, 1]} : vector<4x290xf32> to vector<4x256xf32>
    %75 = vector.extract_strided_slice %0 {offsets = [2, 0], sizes = [1, 256], strides = [1, 1]} : vector<9x256xf32> to vector<1x256xf32>
    %76 = vector.broadcast %75 : vector<1x256xf32> to vector<4x256xf32>
    %77 = arith.mulf %74, %76 : vector<4x256xf32>
    %78 = vector.extract_strided_slice %65 {offsets = [0, 16], sizes = [4, 256], strides = [1, 1]} : vector<4x290xf32> to vector<4x256xf32>
    %79 = vector.extract_strided_slice %0 {offsets = [3, 0], sizes = [1, 256], strides = [1, 1]} : vector<9x256xf32> to vector<1x256xf32>
    %80 = vector.broadcast %79 : vector<1x256xf32> to vector<4x256xf32>
    %81 = arith.mulf %78, %80 : vector<4x256xf32>
    %82 = vector.extract_strided_slice %65 {offsets = [0, 17], sizes = [4, 256], strides = [1, 1]} : vector<4x290xf32> to vector<4x256xf32>
    %83 = vector.extract_strided_slice %0 {offsets = [4, 0], sizes = [1, 256], strides = [1, 1]} : vector<9x256xf32> to vector<1x256xf32>
    %84 = vector.broadcast %83 : vector<1x256xf32> to vector<4x256xf32>
    %85 = arith.mulf %82, %84 : vector<4x256xf32>
    %86 = vector.extract_strided_slice %65 {offsets = [0, 18], sizes = [4, 256], strides = [1, 1]} : vector<4x290xf32> to vector<4x256xf32>
    %87 = vector.extract_strided_slice %0 {offsets = [5, 0], sizes = [1, 256], strides = [1, 1]} : vector<9x256xf32> to vector<1x256xf32>
    %88 = vector.broadcast %87 : vector<1x256xf32> to vector<4x256xf32>
    %89 = arith.mulf %86, %88 : vector<4x256xf32>
    %90 = vector.extract_strided_slice %65 {offsets = [0, 32], sizes = [4, 256], strides = [1, 1]} : vector<4x290xf32> to vector<4x256xf32>
    %91 = vector.extract_strided_slice %0 {offsets = [6, 0], sizes = [1, 256], strides = [1, 1]} : vector<9x256xf32> to vector<1x256xf32>
    %92 = vector.broadcast %91 : vector<1x256xf32> to vector<4x256xf32>
    %93 = arith.mulf %90, %92 : vector<4x256xf32>
    %94 = vector.extract_strided_slice %65 {offsets = [0, 33], sizes = [4, 256], strides = [1, 1]} : vector<4x290xf32> to vector<4x256xf32>
    %95 = vector.extract_strided_slice %0 {offsets = [7, 0], sizes = [1, 256], strides = [1, 1]} : vector<9x256xf32> to vector<1x256xf32>
    %96 = vector.broadcast %95 : vector<1x256xf32> to vector<4x256xf32>
    %97 = arith.mulf %94, %96 : vector<4x256xf32>
    %98 = vector.extract_strided_slice %65 {offsets = [0, 34], sizes = [4, 256], strides = [1, 1]} : vector<4x290xf32> to vector<4x256xf32>
    %99 = vector.extract_strided_slice %0 {offsets = [8, 0], sizes = [1, 256], strides = [1, 1]} : vector<9x256xf32> to vector<1x256xf32>
    %100 = vector.broadcast %99 : vector<1x256xf32> to vector<4x256xf32>
    %101 = arith.mulf %98, %100 : vector<4x256xf32>
    %102 = tpu.concatenate %69, %73, %77, %81, %85, %89, %93, %97, %101 in 0 : vector<4x256xf32>, vector<4x256xf32>, vector<4x256xf32>, vector<4x256xf32>, vector<4x256xf32>, vector<4x256xf32>, vector<4x256xf32>, vector<4x256xf32>, vector<4x256xf32> -> vector<36x256xf32>
    %cst_31 = arith.constant dense<0.000000e+00> : vector<12x256xf32>
    %103 = tpu.matmul %2, %102, %cst_31 {dimension_numbers = #tpu.dot_dimension_numbers<[1], [0], [0], [1], [0, 0, 1, 1], [], []>} : vector<12x36xf32>, vector<36x256xf32>, vector<12x256xf32> -> vector<12x256xf32>
    %104 = vector.broadcast %5 : vector<12x1xf32> to vector<12x256xf32>
    %105 = arith.mulf %103, %104 : vector<12x256xf32>
    %106 = vector.broadcast %6 : vector<12x1xf32> to vector<12x256xf32>
    %107 = arith.addf %105, %106 : vector<12x256xf32>
    %cst_32 = arith.constant 0.000000e+00 : f32
    %108 = vector.broadcast %cst_32 : f32 to vector<12x256xf32>
    %109 = arith.cmpf oge, %107, %108 : vector<12x256xf32>
    %cst_33 = arith.constant 2.000000e-01 : f32
    %110 = vector.broadcast %cst_33 : f32 to vector<12x256xf32>
    %111 = arith.mulf %110, %107 : vector<12x256xf32>
    %112 = arith.select %109, %107, %111 : vector<12x256xi1>, vector<12x256xf32>
    %113 = vector.extract_strided_slice %112 {offsets = [0, 0], sizes = [8, 256], strides = [1, 1]} : vector<12x256xf32> to vector<8x256xf32>
    %114 = vector.extract_strided_slice %112 {offsets = [8, 0], sizes = [4, 256], strides = [1, 1]} : vector<12x256xf32> to vector<4x256xf32>
    %115 = vector.broadcast %7 : vector<4x1xf32> to vector<4x256xf32>
    %116 = arith.mulf %115, %114 : vector<4x256xf32>
    %117 = vector.broadcast %8 : vector<4x1xf32> to vector<4x256xf32>
    %118 = arith.mulf %117, %12 : vector<4x256xf32>
    %119 = arith.addf %116, %118 : vector<4x256xf32>
    %cst_34 = arith.constant dense<0.000000e+00> : vector<256xf32>
    %120 = vector.multi_reduction <add>, %119, %cst_34 [0] : vector<4x256xf32> to vector<256xf32>
    %121 = vector.shape_cast %120 : vector<256xf32> to vector<1x256xf32>
    %122 = vector.broadcast %9 : vector<1x1xf32> to vector<1x256xf32>
    %123 = arith.mulf %121, %122 : vector<1x256xf32>
    %124 = vector.broadcast %10 : vector<1x1xf32> to vector<1x256xf32>
    %125 = arith.addf %123, %124 : vector<1x256xf32>
    %cst_35 = arith.constant 0.000000e+00 : f32
    %126 = vector.broadcast %cst_35 : f32 to vector<1x256xf32>
    %127 = arith.cmpf oge, %125, %126 : vector<1x256xf32>
    %cst_36 = arith.constant 2.000000e-01 : f32
    %128 = vector.broadcast %cst_36 : f32 to vector<1x256xf32>
    %129 = arith.mulf %128, %125 : vector<1x256xf32>
    %130 = arith.select %127, %125, %129 : vector<1x256xi1>, vector<1x256xf32>
    %131 = vector.broadcast %130 : vector<1x256xf32> to vector<4x256xf32>
    %132 = arith.mulf %63, %131 : vector<4x256xf32>
    %133 = arith.addf %132, %12 : vector<4x256xf32>
    %c0_37 = arith.constant 0 : index
    %c0_38 = arith.constant 0 : index
    %c0_39 = arith.constant 0 : index
    %134 = vector.load %arg14[%c0_37, %c0_38, %c0_39] : memref<1x4x256xf32, #tpu.memory_space<vmem>>, vector<1x4x256xf32>
    %135 = vector.shape_cast %134 : vector<1x4x256xf32> to vector<4x256xf32>
    %136 = vector.shape_cast %133 : vector<4x256xf32> to vector<1x4x256xf32>
    tpu.vector_store %arg14[%c0_37, %c0_38, %c0_39], %136 {strides = array<i32>} : memref<1x4x256xf32, #tpu.memory_space<vmem>>, vector<1x4x256xf32>,
    %c0_40 = arith.constant 0 : index
    %c0_41 = arith.constant 0 : index
    %c0_42 = arith.constant 0 : index
    %137 = vector.load %arg15[%c0_40, %c0_41, %c0_42] : memref<1x8x256xf32, #tpu.memory_space<vmem>>, vector<1x8x256xf32>
    %138 = vector.shape_cast %137 : vector<1x8x256xf32> to vector<8x256xf32>
    %139 = vector.shape_cast %113 : vector<8x256xf32> to vector<1x8x256xf32>
    tpu.vector_store %arg15[%c0_40, %c0_41, %c0_42], %139 {strides = array<i32>} : memref<1x8x256xf32, #tpu.memory_space<vmem>>, vector<1x8x256xf32>,
    %c0_43 = arith.constant 0 : index
    %c0_44 = arith.constant 0 : index
    %c0_45 = arith.constant 0 : index
    %140 = vector.load %arg16[%c0_43, %c0_44, %c0_45] : memref<1x4x256xf32, #tpu.memory_space<vmem>>, vector<1x4x256xf32>
    %141 = vector.shape_cast %140 : vector<1x4x256xf32> to vector<4x256xf32>
    %142 = vector.shape_cast %132 : vector<4x256xf32> to vector<1x4x256xf32>
    tpu.vector_store %arg16[%c0_43, %c0_44, %c0_45], %142 {strides = array<i32>} : memref<1x4x256xf32, #tpu.memory_space<vmem>>, vector<1x4x256xf32>,
    return
  }
  func.func @transform_0(%arg0: i32) -> (i32, i32) {
    %c0_i32 = arith.constant 0 : i32
    %c0_i32_0 = arith.constant 0 : i32
    %c0_i32_1 = arith.constant 0 : i32
    return %c0_i32, %c0_i32_0 : i32, i32
  }
  func.func @transform_1(%arg0: i32) -> (i32, i32, i32) {
    %c0_i32 = arith.constant 0 : i32
    %c0_i32_0 = arith.constant 0 : i32
    %c0_i32_1 = arith.constant 0 : i32
    return %arg0, %c0_i32, %c0_i32_0 : i32, i32, i32
  }
  func.func @transform_2(%arg0: i32) -> (i32, i32, i32) {
    %c0_i32 = arith.constant 0 : i32
    %c0_i32_0 = arith.constant 0 : i32
    %c0_i32_1 = arith.constant 0 : i32
    return %arg0, %c0_i32, %c0_i32_0 : i32, i32, i32
  }
  func.func @transform_3(%arg0: i32) -> (i32, i32) {
    %c0_i32 = arith.constant 0 : i32
    %c0_i32_0 = arith.constant 0 : i32
    %c0_i32_1 = arith.constant 0 : i32
    return %c0_i32, %c0_i32_0 : i32, i32
  }
  func.func @transform_4(%arg0: i32) -> (i32, i32) {
    %c0_i32 = arith.constant 0 : i32
    %c0_i32_0 = arith.constant 0 : i32
    %c0_i32_1 = arith.constant 0 : i32
    return %c0_i32, %c0_i32_0 : i32, i32
  }
  func.func @transform_5(%arg0: i32) -> (i32, i32) {
    %c0_i32 = arith.constant 0 : i32
    %c0_i32_0 = arith.constant 0 : i32
    %c0_i32_1 = arith.constant 0 : i32
    return %c0_i32, %c0_i32_0 : i32, i32
  }
  func.func @transform_6(%arg0: i32) -> (i32, i32) {
    %c0_i32 = arith.constant 0 : i32
    %c0_i32_0 = arith.constant 0 : i32
    %c0_i32_1 = arith.constant 0 : i32
    return %c0_i32, %c0_i32_0 : i32, i32
  }
  func.func @transform_7(%arg0: i32) -> (i32, i32) {
    %c0_i32 = arith.constant 0 : i32
    %c0_i32_0 = arith.constant 0 : i32
    %c0_i32_1 = arith.constant 0 : i32
    return %c0_i32, %c0_i32_0 : i32, i32
  }
  func.func @transform_8(%arg0: i32) -> (i32, i32) {
    %c0_i32 = arith.constant 0 : i32
    %c0_i32_0 = arith.constant 0 : i32
    %c0_i32_1 = arith.constant 0 : i32
    return %c0_i32, %c0_i32_0 : i32, i32
  }
  func.func @transform_9(%arg0: i32) -> (i32, i32) {
    %c0_i32 = arith.constant 0 : i32
    %c0_i32_0 = arith.constant 0 : i32
    %c0_i32_1 = arith.constant 0 : i32
    return %c0_i32, %c0_i32_0 : i32, i32
  }
  func.func @transform_10(%arg0: i32) -> (i32, i32) {
    %c0_i32 = arith.constant 0 : i32
    %c0_i32_0 = arith.constant 0 : i32
    %c0_i32_1 = arith.constant 0 : i32
    return %c0_i32, %c0_i32_0 : i32, i32
  }
  func.func @transform_11(%arg0: i32) -> (i32, i32) {
    %c0_i32 = arith.constant 0 : i32
    %c0_i32_0 = arith.constant 0 : i32
    %c0_i32_1 = arith.constant 0 : i32
    return %c0_i32, %c0_i32_0 : i32, i32
  }
  func.func @transform_12(%arg0: i32) -> (i32, i32) {
    %c0_i32 = arith.constant 0 : i32
    %c0_i32_0 = arith.constant 0 : i32
    %c0_i32_1 = arith.constant 0 : i32
    return %c0_i32, %c0_i32_0 : i32, i32
  }
  func.func @transform_13(%arg0: i32) -> (i32, i32, i32) {
    %c0_i32 = arith.constant 0 : i32
    %c0_i32_0 = arith.constant 0 : i32
    %c0_i32_1 = arith.constant 0 : i32
    return %arg0, %c0_i32, %c0_i32_0 : i32, i32, i32
  }
  func.func @transform_14(%arg0: i32) -> (i32, i32, i32) {
    %c0_i32 = arith.constant 0 : i32
    %c0_i32_0 = arith.constant 0 : i32
    %c0_i32_1 = arith.constant 0 : i32
    return %arg0, %c0_i32, %c0_i32_0 : i32, i32, i32
  }
  func.func @transform_15(%arg0: i32) -> (i32, i32, i32) {
    %c0_i32 = arith.constant 0 : i32
    %c0_i32_0 = arith.constant 0 : i32
    %c0_i32_1 = arith.constant 0 : i32
    return %arg0, %c0_i32, %c0_i32_0 : i32, i32, i32
  }
}

</mosaic_0001>

<bundles_post_ra>
// kernel: tpu_custom_call.1
= control target key start
LH: loop header
LB: loop body
LE: loop exit
PB: predicated region body
PF: predicated region fallthrough
CT: control target
= control target key end

     0   :  { %s2656_s0 = inlined_call_operand.vmem [shape: f32[9,256], index: 0, kind: input, shape index: {}]   ;;  %s2657_s1 = inlined_call_operand.vmem [shape: f32[2,4,256], index: 1, kind: input, shape index: {}]   ;;  %s2658_s2 = inlined_call_operand.vmem [shape: f32[2,4,256], index: 2, kind: input, shape index: {}]   ;;  %s2659_s3 = inlined_call_operand.hbm [shape: f32[4,36], index: 3, kind: input, shape index: {}]   ;;  %s2660_s4 = inlined_call_operand.vmem [shape: f32[4,1], index: 4, kind: input, shape index: {}]   ;;  %s2661_s5 = inlined_call_operand.vmem [shape: f32[4,1], index: 5, kind: input, shape index: {}]   ;;  %s2662_s6 = inlined_call_operand.vmem [shape: f32[12,36], index: 6, kind: input, shape index: {}]   ;;  %s2663_s7 = inlined_call_operand.vmem [shape: f32[12,1], index: 7, kind: input, shape index: {}]   ;;  %s2664_s8 = inlined_call_operand.vmem [shape: f32[12,1], index: 8, kind: input, shape index: {}]   ;;  %s2665_s9 = inlined_call_operand.vmem [shape: f32[4,1], index: 9, kind: input, shape index: {}]   ;;  %s2666_s10 = inlined_call_operand.vmem [shape: f32[4,1], index: 10, kind: input, shape index: {}]   ;;  %s2667_s11 = inlined_call_operand.<no memory space> [shape: f32[1,1], index: 11, kind: input, shape index: {}]   ;;  %s2668_s13 = inlined_call_operand.hbm [shape: f32[2,4,256], index: 13, kind: output, shape index: {0}]   ;;  %s2669_s14 = inlined_call_operand.hbm [shape: f32[2,8,256], index: 14, kind: output, shape index: {1}]   ;;  %s2670_s15 = inlined_call_operand.hbm [shape: f32[2,4,256], index: 15, kind: output, shape index: {2}]   ;;  %s2671_s12 = inlined_call_operand.<no memory space> [shape: f32[1,1], index: 12, kind: input, shape index: {}]  }
   0x1   :  { %2681 = sst [smem:[#allocation17_spill]] %s2656_s0  ;;  %v21_v0 = vstv %s2667_s11  ;;  %v23_v1 = vstv %s2671_s12 }
   0x2   :  { %2682 = sst [smem:[#allocation18_spill]] %s2657_s1  ;;  %22 = vst [vmem:[#allocation2] sm:$0x1] %v21_v0  ;;  %24 = vst [vmem:[#allocation3] sm:$0x1] %v23_v1 }
   0x3   :  { %2683 = sst [smem:[#allocation19_spill]] %s2658_s2 }
   0x4   :  { %25 = vsyncpa [#allocation5], 0 }
   0x5   :  { %26 = vsyncpa [#allocation6], 0 }
   0x6   :  { %28 = vsyncpa [#allocation6 + $0x1], 0 }
   0x7   :  { %29 = vsyncpa [#allocation9], 0 }
   0x8   :  { %31 = vsyncpa [#allocation9 + $0x1], 0  ;;  %s2039_s22 = smov 0   ;;  %s2041_s23 = smov 0  }
   0x9   :  { %s2043_s24 = smov 0   ;;  %s2045_s25 = smov 0  }
   0xa LB: > { %2684 = sst [smem:[#allocation14_spill]] %s1925_s24  ;;  %s2060_s11 = sadd.s32 4294967295, %s1929_s25   ;;  %s1929_s25 = sphi %s2045_s25, %s2701_s25   ;;  %s1925_s24 = sphi %s2043_s24, %s2703_s24   ;;  %s1921_s23 = sphi %s2041_s23, %s2705_s23   ;;  %s1917_s22 = sphi %s2039_s22, %s2704_s22  }
   0xb   : > { %s2672_s12 = sadd.s32 4294967294, %s1929_s25   ;;  %s2064_s26 = sadd.s32 1, %s1929_s25  }
   0xc   : > { %2685 = sst [smem:[#allocation15_spill]] %s2064_s26  ;;  %s327_s27 = sadd.s32 1, %s1925_s24 }
   0xd   : > { %s324_s28 = ssub.s32 %s1929_s25, %s2064_s26  ;;  %p337_p0 = scmp.ne.s32.totalorder %s1925_s24, %s1921_s23 }
   0xe   : > { %p325_p1 = scmp.eq.s32.totalorder %s324_s28, 0  ;;  %p338_p2 = scmp.eq.s32.totalorder %s2060_s11, 1 }
   0xf   : > { %p343_p3 = scmp.ne.s32.totalorder %s1921_s23, %s1917_s22  ;;  %p344_p4 = scmp.eq.s32.totalorder %s2672_s12, 1 }
  0x10   : > { %s2077_s29 = scalar_select %p325_p1, %s1925_s24, %s327_s27  }
  0x11   : > { %p2079_p5 = por %p338_p2, %p337_p0  ;;  %p2083_p6 = por %p344_p4, %p343_p3 }
  0x12   : > { %2686 = sst [smem:[#allocation16_spill]] %s2077_s29  ;;  %p1555_p7 = scmp.ge.s32.totalorder %s1929_s25, 1 }
  0x13   : > { %s2687_s30 = scalar_select %p2079_p5, 1, 0 }
  0x14   : > { %s2688_s16 = scalar_select %p2083_p6, 1, 0 }
  0x15   : > { %p403_p8 = scmp.lt.s32.totalorder %s1929_s25, 3  ;;  %p2676_p9 = scmp.eq.s32.totalorder %s2060_s11, 0 }
  0x16   : > { %s1931_s18 = smov [#allocation4]   ;;  %s1775_s28 = scalar_lea.hbm %s2659_s3, 64 }
  0x17   : > { %p2090_p10 = pnand %p1555_p7, %p403_p8  ;;  %s419_s19 = sshll.u32 %s1931_s18, 4  ;;  %s420_s19 = int_to_ptr.vmem [resolvable:$true] %s419_s19 }
  0x18   : > { %p1776_p13 = scmp.ne.s32.totalorder %s2659_s3, %s1775_s28  ;;  %p1782_p3 = scmp.lt.u32.totalorder %s1775_s28, %s2659_s3 }
  0x19   : > { %s2689_s17 = scalar_select %p2090_p10, 1, 0 }
  0x1a   : > { %p1618_p11 = pneg %p2090_p10 }
  0x1c   : > { %p2098_p12 = pnand %p2676_p9, %p1618_p11 }
  0x1e   : > { %p1777_p0 = pneg %p2098_p12 }
  0x20   : > { %p1778_p1 = pnand %p1777_p0, %p1776_p13 }
  0x22   : > { %p1779_p2 = pneg %p1778_p1 }
  0x24   : > { %p1784_p4 = pnand %p1782_p3, %p1779_p2 }
  0x26   : > { %1787 = shalt.err (!%p1784_p4)
}
  0x27   : > { %s1788_s26 = scalar_lea.vmem %s420_s19, 64  ;;  %p1796_p9 = scmp.lt.s32.totalorder %s420_s19, %s420_s19 }
  0x28   : > { %p1789_p7 = scmp.ne.s32.totalorder %s420_s19, %s1788_s26  ;;  %p1797_p6 = scmp.lt.s32.totalorder %s1788_s26, %s1788_s26 }
  0x2a   : > { %p1791_p8 = pnand %p1789_p7, %p1777_p0  ;;  %p1798_p5 = por %p1797_p6, %p1796_p9 }
  0x2c   : > { %p1792_p11 = pneg %p1791_p8 }
  0x2e   : > { %p1799_p10 = pnand %p1798_p5, %p1792_p11 }
  0x30   : > { %1802 = shalt.err (!%p1799_p10)
}
  0x31   : > { %1621 = dma.hbm_to_vmem [thread:$0]  (!%p2098_p12), %s2659_s3, 64, %s420_s19, [#allocation5]  }
  0x32   : > { %p2691_p13 = scmp.ne.s32.totalorder %s2689_s17, 0 }
  0x33   : > { %p2692_p1 = scmp.eq.s32.totalorder (!%p2691_p13), %s2060_s11, 0 }
  0x34   : > { %475 = sbr.rel (%p2691_p13) target bundleno = 674 (0x2a2), region = 72 }
  0x3b   : > { %1904 = dma.done.wait (%p2692_p1), [#allocation5], 64   ;;  %p2693_p0 = pmov %p2692_p1 }
  0x3c   : > { %p538_p6 = scmp.lt.s32.totalorder %s2060_s11, 1  ;;  %v580_v2 = vlaneseq  ;;  %s2694_s2 = sld [smem:[#allocation19_spill]]  ;;  %vm573_vm0 = vcmask 138240   ;;  %vm626_vm1 = vcmask 15360   ;;  %vm648_vm2 = vcmask 130048  }
  0x3d   : > { %1906 = vsyncadd (%p2693_p0), [#allocation5], 4294967232  ;;  %s2695_s0 = sld [smem:[#allocation17_spill]]  ;;  %s2679_s12 = smov 17   ;;  %vm604_vm3 = vcmask 7168   ;;  %vm691_vm4 = vcmask 146432  }
  0x3e   : > { %s2126_s24 = scalar_select %p538_p6, %s2060_s11, 1  ;;  %v581_v3 = vshrl.u32 %v580_v2, 7  ;;  %vm735_vm5 = vcmask 269312   ;;  %vm713_vm6 = vcmask 261120   ;;  %vm757_vm7 = vcmask 277504  }
  0x3f   : > { %s1933_s29 = smov 16   ;;  %s1934_s17 = smov 1   ;;  %vm822_vm8 = vcmask 908288   ;;  %vm839_vm9 = vcmask 900096   ;;  %vm791_vm10 = vcmask 1031168   ;;  %vm870_vm11 = vcmask 777216  }
  0x40   : > { %s1587_s26 = sshll.u32 %s2126_s24, 3  ;;  %v636_v4 = vsub.s32 3, %v581_v3  ;;  %v592_v5 = vsub.s32 1, %v581_v3  ;;  %v614_v13 = vsub.s32 2, %v581_v3  ;;  %v679_v16 = vsub.s32 5, %v581_v3  ;;  %s1935_s19 = smov 2  }
  0x41   : > { %v723_v19 = vsub.s32 7, %v581_v3  ;;  %v658_v22 = vsub.s32 4, %v581_v3  ;;  %s1937_s21 = smov 33   ;;  %v701_v25 = vsub.s32 6, %v581_v3  ;;  %s2696_s1 = sld [smem:[#allocation18_spill]]  ;;  %v2174_v33 = vsub.s32 0, %v581_v3 }
  0x42   : > { %s547_s20 = scalar_lea.vmem %s2694_s2, %s1587_s26  ;;  %s2697_s24 = smov 17   ;;  %vm853_vm12 = vcmask 785408   ;;  %vm777_vm13 = vcmask 1039360   ;;  %vm808_vm14 = vcmask 916480   ;;  %vm887_vm15 = vcmask 1043456  }
  0x43   : > { %v566_v6 = vld [vmem:[%s547_s20] sm:$0xff]  ;;  %v2140_v8 = vld [vmem:[%s2695_s0 + $0x8] sm:$0xff]  ;;  %s1936_s20 = smov 18   ;;  %v1567_v29 = vld [vmem:[%s2695_s0 + $0x10] ss:$0 sm:$0xff]  ;;  %s1942_s27 = smov 111  }
  0x44   : > { %v548_v7 = vld [vmem:[%s2695_s0] sm:$0xff]  ;;  %997 = vrot.lane.b32.xlu0 %v566_v6, %s2679_s12  ;;  %v641_v11 = vrot.slane %v2140_v8, %v636_v4  ;;  %v597_v12 = vrot.slane %v2140_v8, %v592_v5  ;;  %v996_v14 = vcombine.high %v566_v6, %v566_v6  ;;  %v619_v17 = vrot.slane %v2140_v8, %v614_v13  ;;  %v1568_v30 = vld [vmem:[%s2695_s0 + $0x18] ss:$0 sm:$0xff]  ;;  %s1943_s28 = smov 127   ;;  %p2698_p9 = scmp.ne.s32.totalorder %s2687_s30, 0 }
  0x45   : > { %v637_v9 = vrot.slane %v548_v7, %v636_v4  ;;  %v593_v10 = vrot.slane %v548_v7, %v592_v5  ;;  %v615_v15 = vrot.slane %v548_v7, %v614_v13  ;;  %v680_v18 = vrot.slane %v548_v7, %v679_v16 }
  0x46   : > { %v684_v20 = vrot.slane %v2140_v8, %v679_v16  ;;  %v724_v21 = vrot.slane %v548_v7, %v723_v19  ;;  %v728_v23 = vrot.slane %v2140_v8, %v723_v19  ;;  %v659_v24 = vrot.slane %v548_v7, %v658_v22 }
  0x47   : > { %644 = vrot.lane.b32.xlu1 %v637_v9, %s1933_s29  ;;  %v663_v26 = vrot.slane %v2140_v8, %v658_v22  ;;  %v702_v27 = vrot.slane %v548_v7, %v701_v25  ;;  %v706_v28 = vrot.slane %v2140_v8, %v701_v25  ;;  %s542_s18 = scalar_lea.vmem %s2696_s1, %s1587_s26  ;;  %v2177_v34 = vrot.slane %v548_v7, %v2174_v33  ;;  %s1940_s26 = smov 126  }
  0x48   : > { %600 = vrot.lane.b32.xlu0 %v593_v10, %s1934_s17  ;;  %v2164_v31 = vld [vmem:[%s542_s18] sm:$0xff]  ;;  %v2194_v42 = vrot.slane %v2140_v8, %v2174_v33  ;;  %s1944_s18 = smov 112  }
  0x49   : > { %v2168_v32 = vcombine.high %v2164_v31, %v2164_v31 }
  0x4b   : > { %646 = vrot.lane.b32.xlu1 %v641_v11, %s1933_s29  ;;  %s1938_s29 = smov 32  }
  0x4c   : > { %602 = vrot.lane.b32.xlu0 %v597_v12, %s1934_s17  ;;  %s1946_s17 = smov 95  }
  0x4f   : > { %999 = vrot.lane.b32.xlu1 %v996_v14, %s2679_s12 }
  0x50   : > { %622 = vrot.lane.b32.xlu0 %v615_v15, %s1935_s19 }
  0x53   : > { %624 = vrot.lane.b32.xlu1 %v619_v17, %s1935_s19  ;;  %s1948_s19 = smov 94  }
  0x54   : > { %687 = vrot.lane.b32.xlu0 %v680_v18, %s1936_s20 }
  0x57   : > { %689 = vrot.lane.b32.xlu1 %v684_v20, %s1936_s20  ;;  %s1362_s20 = sand.u32 1, %s2060_s11  }
  0x58   : > { %731 = vrot.lane.b32.xlu0 %v724_v21, %s1937_s21 }
  0x5b   : > { %733 = vrot.lane.b32.xlu1 %v728_v23, %s1937_s21  ;;  %s1590_s21 = sshll.u32 %s2060_s11, 8 }
  0x5c   : > { %666 = vrot.lane.b32.xlu0 %v659_v24, %s2679_s12 }
  0x5f   : > { %668 = vrot.lane.b32.xlu1 %v663_v26, %s2679_s12  ;;  %s1939_s12 = smov 34  }
  0x60   : > { %709 = vrot.lane.b32.xlu0 %v702_v27, %s1938_s29 }
  0x63   : > { %711 = vrot.lane.b32.xlu1 %v706_v28, %s1938_s29  ;;  %s1945_s29 = smov 96  }
  0x64   : > { %753 = vrot.lane.b32.xlu0 %v1567_v29, %s1939_s12 }
  0x67   : > { %755 = vrot.lane.b32.xlu1 %v1568_v30, %s1939_s12  ;;  %s1941_s12 = smov 110  }
  0x68   : > { %569 = vrot.lane.b32.xlu0 %v2164_v31, %s2697_s24 }
  0x6b   : > { %571 = vrot.lane.b32.xlu1 %v2168_v32, %s2697_s24 }
  0xb6   : > { %v998_v35 = vpop.permute.xlu0 %997 }
  0xb7   : > { %v2180_v36 = vsel %vm573_vm0, 0.0, %v998_v35 }
  0xb8   : > { %v2184_v38 = vmul.f32 %v2180_v36, %v2177_v34 }
  0xb9   : > { %v645_v37 = vpop.permute.xlu1 %644 }
  0xba   : > { %v2186_v39 = vpop.permute.xlu0 %600  ;;  %v1015_v16 = vmul.f32 %v2180_v36, %v645_v37 }
  0xbb   : > { %v1009_v3 = vmul.f32 %v2180_v36, %v2186_v39 }
  0xbd   : > { %v2188_v40 = vpop.permute.xlu1 %646  ;;  %v1036_v17 = vrot.slane %v1009_v3, 4 }
  0xbe   : > { %v2190_v41 = vpop.permute.xlu0 %602  ;;  %v649_v5 = vsel %vm648_vm2, %v645_v37, %v2188_v40 }
  0xbf   : > { %v605_v6 = vsel %vm604_vm3, %v2186_v39, %v2190_v41 }
  0xc1   : > { %v1000_v43 = vpop.permute.xlu1 %999 }
  0xc2   : > { %v2197_v44 = vsel %vm573_vm0, %v998_v35, %v1000_v43  ;;  %v2199_v45 = vpop.permute.xlu0 %622  ;;  %v2206_v47 = vsel %vm573_vm0, %v1000_v43, 0.0  ;;  %v1065_v35 = vrot.slane %v1015_v16, 4 }
  0xc3   : > { %v2203_v46 = vmul.f32 %v2197_v44, %v2194_v42  ;;  %v1012_v12 = vmul.f32 %v2180_v36, %v2199_v45  ;;  %v1010_v43 = vmul.f32 %v2197_v44, %v605_v6 }
  0xc5   : > { %v2208_v48 = vpop.permute.xlu1 %624 }
  0xc6   : > { %v627_v49 = vsel %vm626_vm1, %v2199_v45, %v2208_v48  ;;  %v1014_v50 = vmul.f32 %v2206_v47, %v2208_v48  ;;  %v2215_v52 = vpop.permute.xlu0 %687  ;;  %vm896_vm1 = vcmask 293888  }
  0xc7   : > { %v1013_v51 = vmul.f32 %v2197_v44, %v627_v49  ;;  %v1021_v53 = vmul.f32 %v2180_v36, %v2215_v52 }
  0xc9   : > { %v2219_v54 = vpop.permute.xlu1 %689  ;;  %v1686_v55 = vpack.i.bf16 %v1014_v50, %v1013_v51  ;;  %v1094_v58 = vrot.slane %v1021_v53, 4 }
  0xca   : > { %v2222_v56 = vpop.permute.xlu0 %731  ;;  %v2271_v18 = vsel %vm691_vm4, %v2215_v52, %v2219_v54  ;;  %v1023_v24 = vmul.f32 %v2206_v47, %v2219_v54 }
  0xcb   : > { %1687 = vrot.lane.b32.xlu1 %v1686_v55, %s1940_s26  ;;  %v1022_v28 = vmul.f32 %v2197_v44, %v2271_v18  ;;  %v1011_v55 = vmul.f32 %v2206_v47, %v2190_v41 }
  0xcd   : > { %v2224_v57 = vpop.permute.xlu1 %733 }
  0xce   : > { %v2227_v59 = vpop.permute.xlu0 %666  ;;  %v1029_v3 = vmul.f32 %v2206_v47, %v2224_v57 }
  0xcf   : > { %1097 = vrot.lane.b32.xlu1 %v1094_v58, %s1941_s12  ;;  %v1018_v60 = vmul.f32 %v2180_v36, %v2227_v59  ;;  %v1096_v58 = vrot.slane %v1023_v24, 4 }
  0xd1   : > { %v2231_v61 = vpop.permute.xlu1 %668  ;;  %1081 = vrot.lane.b32.xlu0 %v1018_v60, %s1942_s27  ;;  %v1095_v60 = vrot.slane %v1022_v28, 4 }
  0xd2   : > { %v2234_v62 = vpop.permute.xlu0 %709  ;;  %v2253_v8 = vsel %vm573_vm0, %v2227_v59, %v2231_v61  ;;  %v1020_v21 = vmul.f32 %v2206_v47, %v2231_v61 }
  0xd3   : > { %v1019_v20 = vmul.f32 %v2197_v44, %v2253_v8  ;;  %v1024_v24 = vmul.f32 %v2180_v36, %v2234_v62 }
  0xd5   : > { %v2236_v63 = vpop.permute.xlu1 %711  ;;  %v1696_v53 = vpack.i.bf16 %v1020_v21, %v1019_v20 }
  0xd6   : > { %v2238_v0 = vpop.permute.xlu0 %753  ;;  %v2284_v25 = vsel %vm713_vm6, %v2234_v62, %v2236_v63  ;;  %v1026_v51 = vmul.f32 %v2206_v47, %v2236_v63 }
  0xd7   : > { %v1025_v50 = vmul.f32 %v2197_v44, %v2284_v25 }
  0xd9   : > { %v2240_v1 = vpop.permute.xlu1 %755 }
  0xda   : > { %v570_v2 = vpop.permute.xlu0 %569  ;;  %v1032_v28 = vmul.f32 %v2206_v47, %v2240_v1 }
  0xdb   : > { %v2245_v4 = vsel %vm573_vm0, 0.0, %v570_v2 }
  0xdc   : > { %v653_v11 = vmul.f32 %v645_v37, %v2245_v4  ;;  %v2292_v37 = vsel %vm735_vm5, %v2222_v56, %v2224_v57  ;;  %v2319_v16 = vmul.f32 %v2177_v34, %v2245_v4 }
  0xdd   : > { %v572_v7 = vpop.permute.xlu1 %571 }
  0xde   : > { %v2256_v9 = vsel %vm573_vm0, %v570_v2, %v572_v7  ;;  %v2259_v10 = vsel %vm573_vm0, %v572_v7, 0.0  ;;  %v799_v26 = vrot.slane %v653_v11, 4  ;;  %v1028_v2 = vmul.f32 %v2197_v44, %v2292_v37 }
  0xdf   : > { %v632_v13 = vmul.f32 %v627_v49, %v2256_v9  ;;  %v610_v14 = vmul.f32 %v605_v6, %v2256_v9  ;;  %v654_v15 = vmul.f32 %v649_v5, %v2256_v9  ;;  %v655_v19 = vmul.f32 %v2188_v40, %v2259_v10 }
  0xe0   : > { %v1016_v7 = vmul.f32 %v2197_v44, %v649_v5  ;;  %v1017_v11 = vmul.f32 %v2206_v47, %v2188_v40  ;;  %v1726_v40 = vpack.i.bf16 %v1096_v58, %v1095_v60  ;;  %v675_v58 = vmul.f32 %v2253_v8, %v2256_v9 }
  0xe1   : > { %v1691_v22 = vpack.i.bf16 %v632_v13, %v1012_v12  ;;  %v769_v23 = vrot.slane %v610_v14, 4  ;;  %v801_v27 = vrot.slane %v655_v19, 4  ;;  %v800_v30 = vrot.slane %v654_v15, 4 }
  0xe2   : > { %v1701_v12 = vpack.i.bf16 %v1026_v51, %v1025_v50  ;;  %v1037_v13 = vrot.slane %v1010_v43, 4  ;;  %v1038_v14 = vrot.slane %v1011_v55, 4  ;;  %v2315_v15 = vmul.f32 %v2194_v42, %v2256_v9 }
  0xe3   : > { %1692 = vrot.lane.b32.xlu0 %v1691_v22, %s1940_s26  ;;  %v1716_v29 = vpack.i.bf16 %v769_v23, %v1036_v17  ;;  %v2295_v49 = vpack.i.bf16 %v799_v26, %v801_v27  ;;  %v1721_v6 = vpack.i.bf16 %v800_v30, %v1065_v35  ;;  %v1124_v17 = vrot.slane %v1028_v2, 4 }
  0xe4   : > { %v1125_v19 = vrot.slane %v1029_v3, 4  ;;  %v1706_v5 = vpack.i.bf16 %v1038_v14, %v1037_v13  ;;  %v1066_v20 = vrot.slane %v1016_v7, 4  ;;  %v1067_v21 = vrot.slane %v1017_v11, 4  ;;  %v558_v13 = vld [vmem:[%s2663_s7 + $0x8] sm:$0xf] }
  0xe5   : > { %1717 = vrot.lane.b32.xlu1 %v1716_v29, %s1943_s28  ;;  %v1027_v22 = vmul.f32 %v2180_v36, %v2222_v56  ;;  %v1947_v26 = vmov 0.0   ;;  %v758_v27 = vsel %vm757_vm7, %v2238_v0, %v2240_v1  ;;  %v696_v29 = vmul.f32 %v2215_v52, %v2245_v4  ;;  %v561_v14 = vld [vmem:[%s2665_s9] sm:$0xf] }
  0xe6   : > { %v1731_v42 = vpack.i.bf16 %v1125_v19, %v1124_v17  ;;  %v1711_v34 = vpack.i.bf16 %v1067_v21, %v1066_v20  ;;  %1229 = vmatprep.mubr.f32.mxu1 %v1947_v26  ;;  %968 = vmatprep.mubr.f32.mxu0 %v1947_v26  ;;  %v611_v30 = vmul.f32 %v2190_v41, %v2259_v10  ;;  %v556_v17 = vld [vmem:[%s2661_s5] sm:$0xf]  ;;  %vm884_vm0 = vcmask 769024  }
  0xe7   : > { %1697 = vrot.lane.b32.xlu0 %v1696_v53, %s1942_s27  ;;  %v1123_v23 = vrot.slane %v1027_v22, 4  ;;  %v1031_v35 = vmul.f32 %v2197_v44, %v758_v27  ;;  %v609_v43 = vmul.f32 %v2186_v39, %v2245_v4  ;;  %v830_v50 = vrot.slane %v696_v29, 4  ;;  %v557_v19 = vld [vmem:[%s2663_s7] sm:$0xff] }
  0xe8   : > { %v770_v47 = vrot.slane %v611_v30, 4  ;;  %v1030_v51 = vmul.f32 %v2180_v36, %v2238_v0  ;;  %v633_v41 = vmul.f32 %v2208_v48, %v2259_v10  ;;  %v631_v44 = vmul.f32 %v2199_v45, %v2245_v4 }
  0xe9   : > { %1722 = vrot.lane.b32.xlu1 %v1721_v6, %s1944_s18  ;;  %v768_v52 = vrot.slane %v609_v43, 4  ;;  %v697_v39 = vmul.f32 %v2271_v18, %v2256_v9  ;;  %v698_v55 = vmul.f32 %v2219_v54, %v2259_v10  ;;  %v676_v48 = vmul.f32 %v2231_v61, %v2259_v10 }
  0xea   : > { %v1736_v36 = vpack.i.bf16 %v631_v44, %v633_v41  ;;  %v741_v45 = vmul.f32 %v2292_v37, %v2256_v9  ;;  %v742_v18 = vmul.f32 %v2224_v57, %v2259_v10  ;;  %v719_v8 = vmul.f32 %v2284_v25, %v2256_v9 }
  0xeb   : > { %1702 = vrot.lane.b32.xlu0 %v1701_v12, %s1945_s29  ;;  %v1751_v53 = vpack.i.bf16 %v768_v52, %v770_v47  ;;  %v831_v60 = vrot.slane %v697_v39, 4  ;;  %v832_v2 = vrot.slane %v698_v55, 4  ;;  %v1741_v54 = vpack.i.bf16 %v676_v48, %v675_v58 }
  0xec   : > { %v720_v61 = vmul.f32 %v2236_v63, %v2259_v10  ;;  %v862_v6 = vrot.slane %v741_v45, 4  ;;  %v863_v7 = vrot.slane %v742_v18, 4  ;;  %v674_v25 = vmul.f32 %v2227_v59, %v2245_v4 }
  0xed   : > { %1727 = vrot.lane.b32.xlu1 %v1726_v40, %s1941_s12  ;;  %v1761_v3 = vpack.i.bf16 %v832_v2, %v831_v60  ;;  %v718_v11 = vmul.f32 %v2234_v62, %v2245_v4  ;;  %v1949_v12 = vmov 0   ;;  %v763_v59 = vmul.f32 %v758_v27, %v2256_v9  ;;  %v562_v9 = vld [vmem:[%s2666_s10] sm:$0xf] }
  0xee   : > { %v1746_v37 = vpack.i.bf16 %v720_v61, %v719_v8  ;;  %v1766_v57 = vpack.i.bf16 %v863_v7, %v862_v6  ;;  %1772 = vset.pattern.permute.xlu0 %v1949_v12  ;;  %1771 = vset.pattern.permute.xlu1 %v1949_v12  ;;  %v762_v62 = vmul.f32 %v2238_v0, %v2245_v4  ;;  %v555_v0 = vld [vmem:[%s2660_s4] sm:$0xf] }
  0xef   : > { %1707 = vrot.lane.b32.xlu0 %v1706_v5, %s1943_s28  ;;  %v559_v40 = vld [vmem:[%s2664_s8] sm:$0xff] }
  0xf1   : > { %1732 = vrot.lane.b32.xlu1 %v1731_v42, %s1946_s17 }
  0xf3   : > { %1712 = vrot.lane.b32.xlu0 %v1711_v34, %s1944_s18 }
  0xf5   : > { %1126 = vrot.lane.b32.xlu1 %v1123_v23, %s1946_s17 }
  0xf7   : > { %1110 = vrot.lane.b32.xlu0 %v1024_v24, %s1945_s29 }
  0xf9   : > { %1143 = vrot.lane.b32.xlu1 %v1032_v28, %s1948_s19 }
  0xfb   : > { %1141 = vrot.lane.b32.xlu0 %v1031_v35, %s1948_s19 }
  0xfd   : > { %833 = vrot.lane.b32.xlu1 %v830_v50, %s1941_s12 }
  0xff   : > { %1139 = vrot.lane.b32.xlu0 %v1030_v51, %s1948_s19 }
 0x101   : > { %1752 = vrot.lane.b32.xlu1 %v1751_v53, %s1943_s28  ;;  %s2525_s28 = scalar_lea.hbm %s2669_s14, %s1590_s21 }
 0x103   : > { %1737 = vrot.lane.b32.xlu0 %v1736_v36, %s1940_s26 }
 0x105   : > { %1757 = vrot.lane.b32.xlu1 %v2295_v49, %s1944_s18  ;;  %v740_v49 = vmul.f32 %v2222_v56, %v2245_v4  ;;  %v764_v56 = vmul.f32 %v2240_v1, %v2259_v10  ;;  %v560_v1 = vld [vmem:[%s2664_s8 + $0x8] sm:$0xf]  ;;  %v563_v10 = vld [vmem:[#allocation2] sm:$0x1]  ;;  %v564_v4 = vld [vmem:[#allocation3] sm:$0x1] }
 0x106   : > { %s2529_s18 = scalar_lea.sflag [#allocation9], %s1362_s20 }
 0x107   : > { %1742 = vrot.lane.b32.xlu0 %v1741_v54, %s1942_s27  ;;  %v861_v63 = vrot.slane %v740_v49, 4 }
 0x109   : > { %1762 = vrot.lane.b32.xlu1 %v1761_v3, %s1941_s12 }
 0x10b   : > { %1747 = vrot.lane.b32.xlu0 %v1746_v37, %s1945_s29 }
 0x10d   : > { %1767 = vrot.lane.b32.xlu1 %v1766_v57, %s1946_s17 }
 0x10f   : > { %816 = vrot.lane.b32.xlu0 %v674_v25, %s1942_s27 }
 0x111   : > { %864 = vrot.lane.b32.xlu1 %v861_v63, %s1946_s17  ;;  %s2517_s17 = sand.u32 1, %s1921_s23  }
 0x113   : > { %847 = vrot.lane.b32.xlu0 %v718_v11, %s1945_s29 }
 0x115   : > { %882 = vrot.lane.b32.xlu1 %v764_v56, %s1948_s19 }
 0x117   : > { %880 = vrot.lane.b32.xlu0 %v763_v59, %s1948_s19 }
 0x119   : > { %1249 = vperm.xlu1 %1771, %v558_v13  }
 0x11b   : > { %878 = vrot.lane.b32.xlu0 %v762_v62, %s1948_s19  ;;  %s1561_s19 = sshll.u32 %s2517_s17, 4 }
 0x11c   : > { %s530_s24 = scalar_lea.vmem [#allocation8], %s1561_s19  ;;  %s1950_s19 = smov [#allocation8]  }
 0x11d   : > { %1284 = vperm.xlu1 %1771, %v561_v14   ;;  %s1396_s26 = sshll.u32 %s530_s24, 4  ;;  %s1807_s21 = sshll.u32 %s1950_s19, 4  ;;  %s2527_s26 = int_to_ptr.vmem [resolvable:$true] %s1396_s26  ;;  %s1808_s21 = int_to_ptr.vmem [resolvable:$false] %s1807_s21 }
 0x11e   : > { %s1803_s29 = scalar_lea.vmem %s2527_s26, 256  ;;  %s1809_s12 = scalar_lea.vmem %s1808_s21, 512 }
 0x11f   : > { %1263 = vperm.xlu0 %1772, %v560_v1   ;;  %p1804_p5 = scmp.ne.s32.totalorder %s2527_s26, %s1803_s29  ;;  %p1810_p2 = scmp.lt.s32.totalorder %s2527_s26, %s1808_s21 }
 0x120   : > { %p1811_p3 = scmp.lt.s32.totalorder %s1809_s12, %s1803_s29 }
 0x121   : > { %1291 = vperm.xlu1 %1771, %v562_v9   ;;  %p1805_p10 = pnand %p1804_p5, %p2698_p9 }
 0x122   : > { %p1812_p4 = por %p1811_p3, %p1810_p2 }
 0x123   : > { %1315 = vperm.xlu0 %1772, %v563_v10   ;;  %p1806_p12 = pneg %p1805_p10 }
 0x125   : > { %977 = vperm.xlu1 %1771, %v555_v0   ;;  %p1813_p7 = pnand %p1812_p4, %p1806_p12 }
 0x127   : > { %1326 = vperm.xlu0 %1772, %v564_v4  }
 0x129   : > { %984 = vperm.xlu1 %1771, %v556_v17  }
 0x12b   : > { %1244 = vperm.xlu0 %1772, %v557_v19  }
 0x12d   : > { %1258 = vperm.xlu1 %1771, %v559_v40  }
 0x13d   : > { %v1688_v5 = vpop.permute.xlu1 %1687 }
 0x13e   : > { %v1690_v29 = vunpack.i.h.bf16 %v1688_v5  ;;  %v1689_v30 = vunpack.i.l.bf16 %v1688_v5 }
 0x140   : > { %v1059_v3 = vsel %vm791_vm10, %v1689_v30, %v1690_v29 }
 0x141   : > { %v1098_v21 = vpop.permute.xlu1 %1097 }
 0x143   : > { %v2420_v20 = vpop.permute.xlu0 %1081 }
 0x155   : > { %v2422_v22 = vpop.permute.xlu0 %1692 }
 0x156   : > { %v1694_v50 = vunpack.i.l.bf16 %v2422_v22 }
 0x157   : > { %v2424_v42 = vpop.permute.xlu1 %1717 }
 0x158   : > { %v1719_v47 = vunpack.i.l.bf16 %v2424_v42  ;;  %v1058_v6 = vsel %vm791_vm10, %v1694_v50, %v1689_v30 }
 0x159   : > { %v1698_v34 = vpop.permute.xlu0 %1697 }
 0x15a   : > { %v1700_v36 = vunpack.i.h.bf16 %v1698_v34  ;;  %v1699_v58 = vunpack.i.l.bf16 %v1698_v34 }
 0x15b   : > { %v2426_v23 = vpop.permute.xlu1 %1722 }
 0x15c   : > { %v1724_v48 = vunpack.i.l.bf16 %v2426_v23  ;;  %v1088_v13 = vsel %vm822_vm8, %v1699_v58, %v1700_v36  ;;  %v1087_v17 = vsel %vm822_vm8, %v2420_v20, %v1699_v58  ;;  %v553_v20 = vld [vmem:[%s2662_s6] sm:$0xff] }
 0x15d   : > { %v1703_v24 = vpop.permute.xlu0 %1702 }
 0x15e   : > { %v1705_v51 = vunpack.i.h.bf16 %v1703_v24  ;;  %v1704_v52 = vunpack.i.l.bf16 %v1703_v24 }
 0x15f   : > { %v1728_v27 = vpop.permute.xlu1 %1727 }
 0x160   : > { %v1730_v53 = vunpack.i.h.bf16 %v1728_v27  ;;  %v1729_v44 = vunpack.i.l.bf16 %v1728_v27  ;;  %v1117_v7 = vsel %vm853_vm12, %v1704_v52, %v1705_v51  ;;  %v1695_v51 = vunpack.i.h.bf16 %v2422_v22 }
 0x161   : > { %v1708_v28 = vpop.permute.xlu0 %1707 }
 0x162   : > { %v1710_v35 = vunpack.i.h.bf16 %v1708_v28  ;;  %v1709_v43 = vunpack.i.l.bf16 %v1708_v28  ;;  %v1104_v37 = vsel %vm839_vm9, %v1729_v44, %v1730_v53  ;;  %v1725_v53 = vunpack.i.h.bf16 %v2426_v23 }
 0x163   : > { %v1733_v41 = vpop.permute.xlu1 %1732  ;;  %v1152_v0 = vsel %vm887_vm15, %v1088_v13, %v1104_v37 }
 0x164   : > { %v1735_v39 = vunpack.i.h.bf16 %v1733_v41  ;;  %v1734_v55 = vunpack.i.l.bf16 %v1733_v41  ;;  %v1046_v2 = vsel %vm777_vm13, %v1709_v43, %v1710_v35  ;;  %v1045_v54 = vsel %vm777_vm13, %v1719_v47, %v1709_v43  ;;  %v554_v41 = vld [vmem:[%s2662_s6 + $0x8] sm:$0xf] }
 0x165   : > { %v1713_v60 = vpop.permute.xlu0 %1712  ;;  %v1148_v49 = vsel %vm887_vm15, %v2203_v46, %v1046_v2  ;;  %v1147_v12 = vsel %vm887_vm15, %v2184_v38, %v1045_v54  ;;  %v1103_v46 = vsel %vm839_vm9, %v1098_v21, %v1729_v44  ;;  %v1720_v43 = vunpack.i.h.bf16 %v2424_v42 }
 0x166   : > { %v1715_v45 = vunpack.i.h.bf16 %v1713_v60  ;;  %v1714_v18 = vunpack.i.l.bf16 %v1713_v60  ;;  %v1133_v8 = vsel %vm870_vm11, %v1734_v55, %v1735_v39  ;;  %v1151_v40 = vsel %vm887_vm15, %v1087_v17, %v1103_v46 }
 0x167   : > { %v1127_v61 = vpop.permute.xlu1 %1126  ;;  %v1154_v59 = vsel %vm887_vm15, %v1117_v7, %v1133_v8 }
 0x168   : > { %v1075_v57 = vsel %vm808_vm14, %v1714_v18, %v1715_v45  ;;  %v1074_v25 = vsel %vm808_vm14, %v1724_v48, %v1714_v18  ;;  %v1132_v9 = vsel %vm870_vm11, %v1127_v61, %v1734_v55  ;;  %v1604_v38 = vpack.c.bf16 %v1154_v59, %v1152_v0 }
 0x169   : > { %v1111_v63 = vpop.permute.xlu0 %1110  ;;  %v1150_v11 = vsel %vm887_vm15, %v1059_v3, %v1075_v57  ;;  %v1149_v56 = vsel %vm887_vm15, %v1058_v6, %v1074_v25 }
 0x16a   : > { %v1116_v62 = vsel %vm853_vm12, %v1111_v63, %v1704_v52  ;;  %v1600_v14 = vpack.c.bf16 %v1150_v11, %v1148_v49  ;;  %v1602_v1 = vpack.c.bf16 %v1149_v56, %v1147_v12 }
 0x16b   : > { %v1144_v10 = vpop.permute.xlu1 %1143  ;;  %v1153_v4 = vsel %vm887_vm15, %v1116_v62, %v1132_v9 }
 0x16c   : > { %1601 = vmatprep.subr.bf16.mxu1 %v1600_v14  ;;  %v1606_v21 = vpack.c.bf16 %v1153_v4, %v1151_v40 }
 0x16d   : > { %v1142_v19 = vpop.permute.xlu0 %1141  ;;  %1603 = vmatpush1.bf16.msra.mxu1 %v1602_v1 }
 0x16e   : > { %1605 = vmatprep.subr.bf16.mxu1 %v1604_v38  ;;  %v1146_v34 = vsel %vm884_vm0, %v1142_v19, %v1144_v10 }
 0x16f   : > { %v2456_v5 = vpop.permute.xlu1 %833 }
 0x171   : > { %v1140_v24 = vpop.permute.xlu0 %1139  ;;  %1607 = vmatpush1.bf16.msra.mxu1 %v1606_v21 }
 0x172   : > { %1572 = vmatprep.subr.msk.mxu1 %vm887_vm15, %v1146_v34  ;;  %v1145_v28 = vsel %vm884_vm0, %v1140_v24, %v1142_v19 }
 0x173   : > { %v1753_v27 = vpop.permute.xlu1 %1752 }
 0x174   : > { %v1754_v29 = vunpack.i.l.bf16 %v1753_v27  ;;  %v1755_v30 = vunpack.i.h.bf16 %v1753_v27 }
 0x175   : > { %v1738_v35 = vpop.permute.xlu0 %1737  ;;  %1573 = vmatpush1.msk.msra.mxu1 %vm887_vm15, %v1145_v28 }
 0x176   : > { %v1740_v50 = vunpack.i.h.bf16 %v1738_v35  ;;  %v1739_v47 = vunpack.i.l.bf16 %v1738_v35  ;;  %1574 = vmatmul.mubr.msk.f32.vlgmr.msra.gmra.mrb[0].mxu1 %vm896_vm1, %v553_v20  ;;  %v779_v55 = vsel %vm777_vm13, %v1720_v43, %v1754_v29  ;;  %v778_v36 = vsel %vm777_vm13, %v1755_v30, %v1720_v43 }
 0x177   : > { %v1758_v52 = vpop.permute.xlu1 %1757  ;;  %1235 = vmatprep.mubr.f32.mxu1 %v1947_v26  ;;  %v889_v23 = vsel %vm887_vm15, %v2315_v15, %v779_v55  ;;  %v888_v61 = vsel %vm887_vm15, %v2319_v16, %v778_v36 }
 0x178   : > { %v1760_v44 = vunpack.i.h.bf16 %v1758_v52  ;;  %v1759_v39 = vunpack.i.l.bf16 %v1758_v52  ;;  %v793_v22 = vsel %vm791_vm10, %v1695_v51, %v1739_v47  ;;  %v792_v26 = vsel %vm791_vm10, %v1740_v50, %v1695_v51 }
 0x179   : > { %v1743_v42 = vpop.permute.xlu0 %1742 }
 0x17a   : > { %1575 = vmatmul.mubr.msk.f32.gmra.mrb[2].mxu1 %vm896_vm1, %v554_v41  ;;  %v810_v58 = vsel %vm808_vm14, %v1725_v53, %v1759_v39  ;;  %v809_v48 = vsel %vm808_vm14, %v1760_v44, %v1725_v53  ;;  %v1745_v7 = vunpack.i.h.bf16 %v1743_v42  ;;  %v1744_v37 = vunpack.i.l.bf16 %v1743_v42 }
 0x17b   : > { %v1763_v60 = vpop.permute.xlu1 %1762  ;;  %v891_v2 = vsel %vm887_vm15, %v793_v22, %v810_v58  ;;  %v890_v45 = vsel %vm887_vm15, %v792_v26, %v809_v48 }
 0x17c   : > { %v1765_v18 = vunpack.i.h.bf16 %v1763_v60  ;;  %v1764_v54 = vunpack.i.l.bf16 %v1763_v60  ;;  %v1592_v8 = vpack.c.bf16 %v891_v2, %v889_v23  ;;  %v1594_v6 = vpack.c.bf16 %v890_v45, %v888_v61 }
 0x17d   : > { %v1748_v3 = vpop.permute.xlu0 %1747  ;;  %v824_v56 = vsel %vm822_vm8, %v1744_v37, %v1745_v7 }
 0x17e   : > { %v1750_v57 = vunpack.i.h.bf16 %v1748_v3  ;;  %v1749_v49 = vunpack.i.l.bf16 %v1748_v3  ;;  %1593 = vmatprep.subr.bf16.mxu0 %v1592_v8  ;;  %v841_v15 = vsel %vm839_vm9, %v1764_v54, %v1765_v18  ;;  %v840_v10 = vsel %vm839_vm9, %v2456_v5, %v1764_v54  ;;  %v552_v5 = vld [vmem:[#allocation4] sm:$0xf] }
 0x17f   : > { %v1768_v25 = vpop.permute.xlu1 %1767  ;;  %1595 = vmatpush1.bf16.msra.mxu0 %v1594_v6  ;;  %v893_v62 = vsel %vm887_vm15, %v824_v56, %v841_v15 }
 0x180   : > { %v1770_v63 = vunpack.i.h.bf16 %v1768_v25  ;;  %v1769_v11 = vunpack.i.l.bf16 %v1768_v25  ;;  %v855_v59 = vsel %vm853_vm12, %v1749_v49, %v1750_v57 }
 0x181   : > { %v817_v12 = vpop.permute.xlu0 %816 }
 0x182   : > { %v872_v16 = vsel %vm870_vm11, %v1769_v11, %v1770_v63  ;;  %v823_v1 = vsel %vm822_vm8, %v817_v12, %v1744_v37 }
 0x183   : > { %v865_v13 = vpop.permute.xlu1 %864  ;;  %v895_v14 = vsel %vm887_vm15, %v855_v59, %v872_v16  ;;  %v892_v38 = vsel %vm887_vm15, %v823_v1, %v840_v10 }
 0x184   : > { %v1596_v46 = vpack.c.bf16 %v895_v14, %v893_v62  ;;  %v871_v0 = vsel %vm870_vm11, %v865_v13, %v1769_v11 }
 0x185   : > { %v848_v9 = vpop.permute.xlu0 %847 }
 0x186   : > { %v854_v4 = vsel %vm853_vm12, %v848_v9, %v1749_v49  ;;  %1597 = vmatprep.subr.bf16.mxu0 %v1596_v46 }
 0x187   : > { %v894_v17 = vsel %vm887_vm15, %v854_v4, %v871_v0  ;;  %v883_v40 = vpop.permute.xlu1 %882 }
 0x188   : > { %v1598_v19 = vpack.c.bf16 %v894_v17, %v892_v38 }
 0x189   : > { %v881_v21 = vpop.permute.xlu0 %880 }
 0x18a   : > { %v886_v34 = vsel %vm884_vm0, %v881_v21, %v883_v40  ;;  %1599 = vmatpush1.bf16.msra.mxu0 %v1598_v19 }
 0x18b   : > { %1569 = vmatprep.subr.msk.mxu0 %vm887_vm15, %v886_v34 }
 0x18d   : > { %v879_v24 = vpop.permute.xlu0 %878 }
 0x18e   : > { %v885_v27 = vsel %vm884_vm0, %v879_v24, %v881_v21 }
 0x18f   : > { %1570 = vmatpush1.msk.msra.mxu0 %vm887_vm15, %v885_v27 }
 0x190   : > { %1571 = vmatmul.mubr.msk.f32.vlgmr.msra.gmra.mrb[0].mxu0 %vm896_vm1, %v552_v5 }
 0x198   : > { %v1250_v20 = vpop.permute.xlu1 %1249 }
 0x19c   : > { %v2504_v28 = vpop.permute.xlu1 %1284 }
 0x19e   : > { %v1264_v29 = vpop.permute.xlu0 %1263 }
 0x1a0   : > { %v2506_v30 = vpop.permute.xlu1 %1291 }
 0x1a2   : > { %v2508_v35 = vpop.permute.xlu0 %1315 }
 0x1a4   : > { %v2510_v43 = vpop.permute.xlu1 %977 }
 0x1a6   : > { %v2512_v50 = vpop.permute.xlu0 %1326 }
 0x1a8   : > { %v2514_v47 = vpop.permute.xlu1 %984 }
 0x1aa   : > { %v1245_v51 = vpop.permute.xlu0 %1244 }
 0x1ac   : > { %v1259_v41 = vpop.permute.xlu1 %1258 }
 0x249   : > { %v1231_v52 = vpop.f32.mrb[0].mxu1 }
 0x24a   : > { %v1252_v53 = vmul.f32 %v1245_v51, %v1231_v52  ;;  %v1233_v44 = vpop.f32.mrb[1].mxu1 }
 0x24b   : > { %v1253_v39 = vmul.f32 %v1245_v51, %v1233_v44 }
 0x24c   : > { %v1266_v55 = vadd.f32 %v1259_v41, %v1252_v53 }
 0x24d   : > { %v1267_v42 = vadd.f32 %v1259_v41, %v1253_v39  ;;  %v1237_v36 = vpop.f32.mrb[2].mxu1 }
 0x24e   : > { %vm1270_vm2 = vcmp.ge.f32.partialorder %v1266_v55, 0.0  ;;  %v1274_v22 = vmul.f32 0.2, %v1266_v55  ;;  %v1254_v58 = vmul.f32 %v1250_v20, %v1237_v36  ;;  %v1239_v26 = vpop.f32.mrb[3].mxu1 }
 0x24f   : > { %vm1271_vm3 = vcmp.ge.f32.partialorder %v1267_v42, 0.0  ;;  %v1275_v48 = vmul.f32 0.2, %v1267_v42  ;;  %v1255_v60 = vmul.f32 %v1250_v20, %v1239_v26 }
 0x250   : > { %v1278_v23 = vsel %vm1270_vm2, %v1266_v55, %v1274_v22  ;;  %v1268_v2 = vadd.f32 %v1264_v29, %v1254_v58 }
 0x251   : > { %v1279_v45 = vsel %vm1271_vm3, %v1267_v42, %v1275_v48  ;;  %1350 = vst [vmem:[%s530_s24] sm:$0xff] %v1278_v23  ;;  %v1269_v18 = vadd.f32 %v1264_v29, %v1255_v60 }
 0x252   : > { %1351 = vst [vmem:[%s530_s24 + $0x8] sm:$0xff] %v1279_v45  ;;  %vm1272_vm4 = vcmp.ge.f32.partialorder %v1268_v2, 0.0  ;;  %v1276_v54 = vmul.f32 0.2, %v1268_v2 }
 0x253   : > { %vm1273_vm5 = vcmp.ge.f32.partialorder %v1269_v18, 0.0  ;;  %v1277_v8 = vmul.f32 0.2, %v1269_v18 }
 0x254   : > { %1816 = shalt.err (!%p1813_p7)
}
 0x255   : > { %s1817_s20 = scalar_lea.hbm %s2525_s28, 256  ;;  %s1821_s19 = scalar_lea.hbm %s2669_s14, 512 }
 0x256   : > { %p1818_p8 = scmp.ne.s32.totalorder %s2525_s28, %s1817_s20  ;;  %p1822_p1 = scmp.lt.u32.totalorder %s2525_s28, %s2669_s14 }
 0x257   : > { %p1823_p0 = scmp.lt.u32.totalorder %s1821_s19, %s1817_s20  ;;  %p1825_p5 = scmp.lt.u32.totalorder %s1817_s20, %s2525_s28 }
 0x258   : > { %p1819_p11 = pnand %p1818_p8, %p2698_p9 }
 0x259   : > { %p1824_p6 = por %p1823_p0, %p1822_p1 }
 0x25a   : > { %p1820_p13 = pneg %p1819_p11 }
 0x25b   : > { %p1826_p10 = por %p1825_p5, %p1824_p6 }
 0x25d   : > { %p1827_p12 = pnand %p1826_p10, %p1820_p13 }
 0x25f   : > { %1830 = shalt.err (!%p1827_p12)
}
 0x260   : > { %1613 = dma.vmem_to_hbm [thread:$0]  (%p2698_p9), %s2527_s26, 256, %s2525_s28, %s2529_s18   ;;  %v1280_v61 = vsel %vm1272_vm4, %v1268_v2, %v1276_v54  ;;  %v1295_v3 = vmul.f32 %v2506_v30, %v2164_v31  ;;  %v1281_v7 = vsel %vm1273_vm5, %v1269_v18, %v1277_v8  ;;  %v1296_v37 = vmul.f32 %v2506_v30, %v2168_v32 }
 0x261   : > { %v1287_v6 = vmul.f32 %v2504_v28, %v1280_v61  ;;  %v1288_v57 = vmul.f32 %v2504_v28, %v1281_v7  ;;  %v1321_v10 = vrot.slane %v2508_v35, %v2174_v33  ;;  %v1332_v40 = vrot.slane %v2512_v50, %v2174_v33  ;;  %s1560_s0 = sshll.u32 %s2517_s17, 3  ;;  %s1589_s26 = sshll.u32 %s2060_s11, 7 }
 0x262   : > { %s537_s28 = scalar_lea.vmem [#allocation10], %s1560_s0  ;;  %s2574_s12 = scalar_lea.vmem [#allocation7], %s1560_s0 }
 0x263   : > { %v1297_v49 = vadd.f32 %v1295_v3, %v1287_v6  ;;  %v1298_v25 = vadd.f32 %v1296_v37, %v1288_v57  ;;  %v970_v9 = vpop.f32.mrb[0].mxu0  ;;  %s1410_s29 = sshll.u32 %s537_s28, 4  ;;  %s1382_s20 = sshll.u32 %s2574_s12, 4  ;;  %s2583_s29 = int_to_ptr.vmem [resolvable:$true] %s1410_s29  ;;  %s2590_s20 = int_to_ptr.vmem [resolvable:$true] %s1382_s20 }
 0x264   : > { %v980_v4 = vmul.f32 %v2510_v43, %v970_v9  ;;  %v972_v38 = vpop.f32.mrb[1].mxu0  ;;  %s2581_s19 = scalar_lea.hbm %s2670_s15, %s1589_s26  ;;  %s2588_s0 = scalar_lea.hbm %s2668_s13, %s1589_s26 }
 0x265   : > { %v1299_v15 = vsel %vm887_vm15, %v1297_v49, 0.0  ;;  %v1306_v11 = vsel %vm887_vm15, %v1298_v25, 0.0  ;;  %v981_v19 = vmul.f32 %v2510_v43, %v972_v38  ;;  %s1831_s1 = scalar_lea.vmem %s2583_s29, 128  ;;  %s1951_s24 = smov [#allocation10]  }
 0x266   : > { %v1300_v63 = vrot.slane %v1299_v15, 4  ;;  %v1307_v12 = vrot.slane %v1306_v11, 4  ;;  %v987_v21 = vadd.f32 %v2514_v47, %v980_v4  ;;  %p1832_p2 = scmp.ne.s32.totalorder %s2583_s29, %s1831_s1  ;;  %s1835_s27 = sshll.u32 %s1951_s24, 4  ;;  %s1836_s27 = int_to_ptr.vmem [resolvable:$false] %s1835_s27 }
 0x267   : > { %v988_v24 = vadd.f32 %v2514_v47, %v981_v19  ;;  %s1837_s2 = scalar_lea.vmem %s1836_s27, 256  ;;  %p1838_p7 = scmp.lt.s32.totalorder %s2583_s29, %s1836_s27 }
 0x268   : > { %v1301_v56 = vadd.f32 %v1300_v63, %v1299_v15  ;;  %v1308_v59 = vadd.f32 %v1307_v12, %v1306_v11  ;;  %v991_v27 = vmul.f32 0.2, %v987_v21  ;;  %vm989_vm6 = vcmp.ge.f32.partialorder %v987_v21, 0.0  ;;  %p1833_p3 = pnand %p1832_p2, %p2698_p9  ;;  %p1839_p8 = scmp.lt.s32.totalorder %s1837_s2, %s1831_s1 }
 0x269   : > { %v992_v28 = vmul.f32 0.2, %v988_v24  ;;  %vm990_vm8 = vcmp.ge.f32.partialorder %v988_v24, 0.0 }
 0x26a   : > { %v1302_v16 = vrot.slane %v1301_v56, 2  ;;  %v1309_v13 = vrot.slane %v1308_v59, 2  ;;  %v993_v43 = vsel %vm989_vm6, %v987_v21, %v991_v27  ;;  %p1834_p4 = pneg %p1833_p3  ;;  %p1840_p11 = por %p1839_p8, %p1838_p7 }
 0x26b   : > { %v994_v51 = vsel %vm990_vm8, %v988_v24, %v992_v28 }
 0x26c   : > { %v1303_v62 = vadd.f32 %v1302_v16, %v1301_v56  ;;  %v1310_v14 = vadd.f32 %v1309_v13, %v1308_v59  ;;  %p1841_p13 = pnand %p1840_p11, %p1834_p4 }
 0x26e   : > { %v1304_v1 = vrot.slane %v1303_v62, 1  ;;  %v1311_v46 = vrot.slane %v1310_v14, 1 }
 0x270   : > { %v1305_v0 = vadd.f32 %v1304_v1, %v1303_v62  ;;  %v1312_v17 = vadd.f32 %v1311_v46, %v1310_v14 }
 0x272   : > { %v1322_v34 = vmul.f32 %v1321_v10, %v1305_v0  ;;  %v1323_v5 = vmul.f32 %v1321_v10, %v1312_v17 }
 0x274   : > { %v1333_v20 = vadd.f32 %v1332_v40, %v1322_v34  ;;  %v1334_v29 = vadd.f32 %v1332_v40, %v1323_v5 }
 0x276   : > { %vm1335_vm7 = vcmp.ge.f32.partialorder %v1333_v20, 0.0  ;;  %v1337_v30 = vmul.f32 0.2, %v1333_v20  ;;  %vm1336_vm9 = vcmp.ge.f32.partialorder %v1334_v29, 0.0  ;;  %v1338_v35 = vmul.f32 0.2, %v1334_v29 }
 0x278   : > { %v1339_v33 = vsel %vm1335_vm7, %v1333_v20, %v1337_v30  ;;  %v1340_v52 = vsel %vm1336_vm9, %v1334_v29, %v1338_v35 }
 0x279   : > { %v1341_v50 = vmul.f32 %v1339_v33, %v993_v43  ;;  %v1342_v47 = vmul.f32 %v1340_v52, %v994_v51 }
 0x27b   : > { %v1343_v41 = vadd.f32 %v1341_v50, %v2164_v31  ;;  %v1344_v53 = vadd.f32 %v1342_v47, %v2168_v32  ;;  %v1354_v44 = vcombine.low %v1341_v50, %v1342_v47 }
 0x27d   : > { %v1347_v39 = vcombine.low %v1343_v41, %v1344_v53  ;;  %1356 = vst [vmem:[%s537_s28] sm:$0xff] %v1354_v44 }
 0x27e   : > { %1844 = shalt.err (!%p1841_p13)
}
 0x27f   : > { %s1845_s26 = scalar_lea.hbm %s2581_s19, 128  ;;  %s1849_s21 = scalar_lea.hbm %s2670_s15, 256 }
 0x280   : > { %p1846_p1 = scmp.ne.s32.totalorder %s2581_s19, %s1845_s26  ;;  %p1850_p5 = scmp.lt.u32.totalorder %s2581_s19, %s2670_s15 }
 0x281   : > { %p1851_p10 = scmp.lt.u32.totalorder %s1849_s21, %s1845_s26  ;;  %p1853_p2 = scmp.lt.u32.totalorder %s1845_s26, %s2581_s19 }
 0x282   : > { %p1847_p0 = pnand %p1846_p1, %p2698_p9 }
 0x283   : > { %p1852_p12 = por %p1851_p10, %p1850_p5 }
 0x284   : > { %p1848_p6 = pneg %p1847_p0 }
 0x285   : > { %p1854_p3 = por %p1853_p2, %p1852_p12 }
 0x287   : > { %p1855_p4 = pnand %p1854_p3, %p1848_p6 }
 0x289   : > { %1858 = shalt.err (!%p1855_p4)
}
 0x28a   : > { %1614 = dma.vmem_to_hbm [thread:$0]  (%p2698_p9), %s2583_s29, 128, %s2581_s19, %s2529_s18   ;;  %1349 = vst [vmem:[%s2574_s12] sm:$0xff] %v1347_v39 }
 0x28b   : > { %s1358_s1 = scalar_lea.sflag [#allocation6], %s2517_s17  ;;  %s1859_s2 = scalar_lea.vmem %s2590_s20, 128 }
 0x28c   : > { %p1860_p7 = scmp.ne.s32.totalorder %s2590_s20, %s1859_s2  ;;  %s1952_s26 = smov [#allocation7]  }
 0x28d   : > { %s1863_s28 = sshll.u32 %s1952_s26, 4  ;;  %s1864_s28 = int_to_ptr.vmem [resolvable:$false] %s1863_s28 }
 0x28e   : > { %p1861_p8 = pnand %p1860_p7, %p2698_p9  ;;  %s1865_s11 = scalar_lea.vmem %s1864_s28, 256 }
 0x28f   : > { %p1866_p13 = scmp.lt.s32.totalorder %s2590_s20, %s1864_s28  ;;  %p1867_p1 = scmp.lt.s32.totalorder %s1865_s11, %s1859_s2 }
 0x290   : > { %p1862_p11 = pneg %p1861_p8 }
 0x291   : > { %p1868_p0 = por %p1867_p1, %p1866_p13 }
 0x293   : > { %p1869_p6 = pnand %p1868_p0, %p1862_p11 }
 0x295   : > { %1872 = shalt.err (!%p1869_p6)
}
 0x296   : > { %s1873_s17 = scalar_lea.hbm %s2588_s0, 128  ;;  %s1877_s12 = scalar_lea.hbm %s2668_s13, 256 }
 0x297   : > { %p1874_p5 = scmp.ne.s32.totalorder %s2588_s0, %s1873_s17  ;;  %p1878_p2 = scmp.lt.u32.totalorder %s2588_s0, %s2668_s13 }
 0x298   : > { %p1879_p3 = scmp.lt.u32.totalorder %s1877_s12, %s1873_s17  ;;  %p1881_p7 = scmp.lt.u32.totalorder %s1873_s17, %s2588_s0 }
 0x299   : > { %p1875_p10 = pnand %p1874_p5, %p2698_p9 }
 0x29a   : > { %p1880_p4 = por %p1879_p3, %p1878_p2 }
 0x29b   : > { %p1876_p12 = pneg %p1875_p10 }
 0x29c   : > { %p1882_p8 = por %p1881_p7, %p1880_p4 }
 0x29e   : > { %p1883_p11 = pnand %p1882_p8, %p1876_p12 }
 0x2a0   : > { %1886 = shalt.err (!%p1883_p11)
}
 0x2a1   : > { %1612 = dma.vmem_to_hbm [thread:$0]  (%p2698_p9), %s2590_s20, 128, %s2588_s0, %s1358_s1  }
 0x2a2 PF: > { %p1634_p13 = scmp.ge.s32.totalorder %s1929_s25, 2  ;;  %s1422_s24 = sand.u32 1, %s1917_s22  }
 0x2a3   : > { %p2699_p1 = scmp.ne.s32.totalorder %s2688_s16, 0  ;;  %s1423_s27 = scalar_lea.sflag [#allocation6], %s1422_s24 }
 0x2a5   : > { %p1623_p0 = pnand %p1634_p13, %p2699_p1 }
 0x2a7   : > { %1908 = dma.done.wait (!%p1623_p0), %s1423_s27, 128  }
 0x2a8   : > { %1910 = vsyncadd (!%p1623_p0), %s1423_s27, 4294967168  ;;  %s2700_s2 = sadd.s32 4294967294, %s1929_s25  }
 0x2a9   : > { %s1431_s26 = sand.u32 1, %s2700_s2  }
 0x2aa   : > { %s1432_s28 = scalar_lea.sflag [#allocation9], %s1431_s26 }
 0x2ab   : > { %1912 = dma.done.wait (!%p1623_p0), %s1432_s28, 384  }
 0x2ac   : > { %1914 = vsyncadd (!%p1623_p0), %s1432_s28, 4294966912  ;;  %s2701_s25 = sld [smem:[#allocation15_spill]]  ;;  %s2702_s30 = sld [smem:[#allocation14_spill]] }
 0x2ad   : > { %s2703_s24 = sld [smem:[#allocation16_spill]]  ;;  %s2704_s22 = smov %s1921_s23 }
 0x2b2   : > { %p34_p9 = scmp.ge.s32.totalorder %s2701_s25, 4   ;;  %s2705_s23 = smov %s2702_s30 }
 0x2b4   :  { %36 = sbr.rel (!%p34_p9) target bundleno = 10 (0xa), region = 147 }
 0x2bb   :  { %1446 = vsyncpa [#allocation5], 1 }
 0x2bc   :  { %1448 = vsyncpa [#allocation5 + $0x1], 1 }
 0x2bd   :  { %1449 = vsyncpa [#allocation6], 1 }
 0x2be   :  { %1451 = vsyncpa [#allocation6 + $0x1], 1 }
 0x2bf   :  { %1452 = vsyncpa [#allocation9], 1 }
 0x2c0   :  { %1454 = vsyncpa [#allocation9 + $0x1], 1 }

</bundles_post_ra>
